<compile_context>
chip_gen: v5e
topology: v5e:2x2
jax: 0.10.0
libtpu: 0.0.40
codegen_flags: <defaults>
</compile_context>

<pallas_src>
import numpy as np
import jax
import jax.numpy as jnp
from jax.experimental import pallas as pl
from jax.experimental.pallas import tpu as pltpu  # noqa: F401  (no scratch/grid needed at this size)

HIDDEN = 15
INPUT_DIM = 1          # len(['PBR'])
NUM_LAYERS = 3
OUTPUT_DIM = 1
GP = 32                # padded hidden width per gate
G4 = 4 * GP            # lane-packed gate width == one vreg of lanes


# ----------------------------- Pallas kernel ------------------------------ #
def lstm_wave_kernel(pre0_ref, whh0_ref, wst_ref, brec_ref, wfc_ref, bfc_ref,
                     out_ref):
    # pre0_ref : (T, B, 128)       layer-0 pre-activations x@W_ih0^T + b_ih0 + b_hh0,
    #                              lane-packed [i | f | g | o] (32 lanes each)
    # whh0_ref : (GP, 128)         layer-0 hidden->gate weights (padded rows zero)
    # wst_ref  : (L-1, 2*GP, 128)  row-stacked [W_ih ; W_hh], layers 1..L-1
    # brec_ref : (L-1, 1, 128)     combined biases b_ih + b_hh, layers 1..L-1
    # wfc_ref  : (GP, OUTPUT_DIM)  final linear (padded rows zero)
    # bfc_ref  : (1, OUTPUT_DIM)
    # out_ref  : (B, OUTPUT_DIM)
    T, B, _ = pre0_ref.shape
    L = wst_ref.shape[0] + 1

    # Loop-invariant hoists (weights fit comfortably in vregs; biases broadcast once).
    whh0 = whh0_ref[...]
    wst = [wst_ref[l] for l in range(L - 1)]
    bias = [jnp.broadcast_to(brec_ref[l], (B, G4)) for l in range(L - 1)]

    def dot(a, w):
        return jnp.dot(a, w, preferred_element_type=jnp.float32)

    def cell(gates, c_prev):
        # 2 EUP issues over the full 128 lanes, then static lane slices.
        a = jax.nn.sigmoid(gates)
        t = jnp.tanh(gates)
        i = a[:, 0 * GP:1 * GP]
        f = a[:, 1 * GP:2 * GP]
        g = t[:, 2 * GP:3 * GP]
        o = a[:, 3 * GP:4 * GP]
        c_new = f * c_prev + i * g
        h_new = o * jnp.tanh(c_new)
        return h_new, c_new

    def wave_step(s, h, c, active):
        # Wavefront: at virtual step s, layer l processes timestep s - l.
        # Reads use the pre-step snapshot (h, c); writes are deferred.
        h = list(h)
        c = list(c)
        new = []
        for l in active:                                   # static Python loop
            if l == 0:
                gates = pre0_ref[s] + dot(h[0], whh0)      # input proj hoisted to wrapper
            else:
                x_cat = jnp.concatenate([h[l - 1], h[l]], axis=-1)   # (B, 2*GP)
                gates = dot(x_cat, wst[l - 1]) + bias[l - 1]
            new.append((l,) + cell(gates, c[l]))
        for l, hn, cn in new:
            h[l] = hn
            c[l] = cn
        return tuple(h), tuple(c)

    def active_at(s):
        return tuple(l for l in range(L) if 0 <= s - l < T)

    zeros = jnp.zeros((B, GP), jnp.float32)
    h = (zeros,) * L
    c = (zeros,) * L

    # ramp-up (layers switch on one per virtual step) -- fully static
    for s in range(L - 1):
        h, c = wave_step(s, h, c, active_at(s))

    # steady state: all L layers active -> L independent recurrent chains/step
    if T > L - 1:
        n_steady = T - (L - 1)
        unroll = True if n_steady <= 8 else 8

        def steady(s, carry):
            hh, cc = carry
            return wave_step(s, hh, cc, tuple(range(L)))

        h, c = jax.lax.fori_loop(L - 1, T, steady, (h, c), unroll=unroll)

    # ramp-down
    for s in range(max(L - 1, T), T + L - 1):
        h, c = wave_step(s, h, c, active_at(s))

    # final fully-connected layer on the last layer's hidden state at t = T-1
    out_ref[...] = dot(h[L - 1], wfc_ref[...]) + bfc_ref[...]


def lstm_forward_pallas(x, params):
    """x: (B, T, INPUT_DIM) float32 -> (B, OUTPUT_DIM) float32."""
    w0, b0, whh0, wst, brec, wfc, bfc = params
    B, T, _ = x.shape
    x_t = jnp.transpose(x.astype(jnp.float32), (1, 0, 2))        # (T, B, in)
    # Layer-0 input projection + biases, hoisted out of the recurrence (rank-1),
    # lane-packed to (T, B, 128).
    pre0 = jnp.einsum('tbi,ig->tbg', x_t, w0) + b0

    return pl.pallas_call(
        lstm_wave_kernel,
        out_shape=jax.ShapeDtypeStruct((B, OUTPUT_DIM), jnp.float32),
    )(pre0, whh0, wst, brec, wfc, bfc)


# --------------------------- parameter creation ---------------------------- #
def _pack_gate_cols(w, in_dim):
    """(4H, in) -> (in, 4*GP): lane-packed so `x @ result` == [i|f|g|o] gates."""
    w4 = w.reshape(4, HIDDEN, in_dim)                    # (4, H, in), gate order i,f,g,o
    w4 = jnp.transpose(w4, (2, 0, 1))                    # (in, 4, H)
    w4 = jnp.pad(w4, ((0, 0), (0, 0), (0, GP - HIDDEN))) # (in, 4, GP)
    return w4.reshape(in_dim, G4)


def _pack_bias(b):
    """(4H,) -> (G4,): lane-packed, padded lanes zero."""
    b4 = b.reshape(4, HIDDEN)
    b4 = jnp.pad(b4, ((0, 0), (0, GP - HIDDEN)))
    return b4.reshape(G4)


def init_params(key):
    """Deterministic init, matching nn.LSTM / nn.Linear default U(-1/sqrt(H), 1/sqrt(H))."""
    k = 1.0 / np.sqrt(HIDDEN)
    keys = jax.random.split(key, 4 * NUM_LAYERS + 2)
    raw = {}
    ki = 0
    for l in range(NUM_LAYERS):
        in_dim = INPUT_DIM if l == 0 else HIDDEN
        w_ih = jax.random.uniform(keys[ki], (4 * HIDDEN, in_dim), jnp.float32, -k, k); ki += 1
        w_hh = jax.random.uniform(keys[ki], (4 * HIDDEN, HIDDEN), jnp.float32, -k, k); ki += 1
        b_ih = jax.random.uniform(keys[ki], (4 * HIDDEN,), jnp.float32, -k, k); ki += 1
        b_hh = jax.random.uniform(keys[ki], (4 * HIDDEN,), jnp.float32, -k, k); ki += 1
        raw[f'l{l}'] = (w_ih, w_hh, b_ih, b_hh)
    raw['fc_w'] = jax.random.uniform(keys[ki], (OUTPUT_DIM, HIDDEN), jnp.float32, -k, k); ki += 1
    raw['fc_b'] = jax.random.uniform(keys[ki], (OUTPUT_DIM,), jnp.float32, -k, k)

    # layer 0: input projection used in the wrapper, recurrent weights lane-packed
    w_ih0, w_hh0, b_ih0, b_hh0 = raw['l0']
    w0 = _pack_gate_cols(w_ih0, INPUT_DIM)                                   # (1, 128)
    b0 = _pack_bias(b_ih0 + b_hh0).reshape(1, 1, G4)                         # (1, 1, 128)
    whh0 = jnp.pad(_pack_gate_cols(w_hh0, HIDDEN),
                   ((0, GP - HIDDEN), (0, 0)))                               # (32, 128)

    # layers 1..L-1: fused [W_ih ; W_hh] stacked along the contraction axis
    wst_list, brec_list = [], []
    for l in range(1, NUM_LAYERS):
        w_ih, w_hh, b_ih, b_hh = raw[f'l{l}']
        wih_p = jnp.pad(_pack_gate_cols(w_ih, HIDDEN), ((0, GP - HIDDEN), (0, 0)))  # (32,128)
        whh_p = jnp.pad(_pack_gate_cols(w_hh, HIDDEN), ((0, GP - HIDDEN), (0, 0)))  # (32,128)
        wst_list.append(jnp.concatenate([wih_p, whh_p], axis=0))                    # (64,128)
        brec_list.append(_pack_bias(b_ih + b_hh).reshape(1, G4))
    wst = jnp.stack(wst_list)                                                # (L-1, 64, 128)
    brec = jnp.stack(brec_list)                                              # (L-1, 1, 128)

    wfc = jnp.pad(raw['fc_w'].T, ((0, GP - HIDDEN), (0, 0)))                 # (32, 1)
    bfc = raw['fc_b'].reshape(1, OUTPUT_DIM)
    return raw, (w0, b0, whh0, wst, brec, wfc, bfc)


# ---------------------------- pure-JAX reference --------------------------- #
def ref_forward(x, raw):
    B, T, _ = x.shape
    inp = x
    for l in range(NUM_LAYERS):
        w_ih, w_hh, b_ih, b_hh = raw[f'l{l}']
        h = jnp.zeros((B, HIDDEN), jnp.float32)
        c = jnp.zeros((B, HIDDEN), jnp.float32)
        outs = []
        for t in range(T):
            xt = inp[:, t, :]
            gates = xt @ w_ih.T + b_ih + h @ w_hh.T + b_hh
            i, f, g, o = jnp.split(gates, 4, axis=-1)
            i = jax.nn.sigmoid(i)
            f = jax.nn.sigmoid(f)
            g = jnp.tanh(g)
            o = jax.nn.sigmoid(o)
            c = f * c + i * g
            h = o * jnp.tanh(c)
            outs.append(h)
        inp = jnp.stack(outs, axis=1)
    return inp[:, -1, :] @ raw['fc_w'].T + raw['fc_b']


if __name__ == "__main__":
    B, T = 2, 8
    key = jax.random.PRNGKey(0)
    k_param, k_x = jax.random.split(key)
    raw, packed = init_params(k_param)
    x = jax.random.normal(k_x, (B, T, INPUT_DIM), jnp.float32)

    out = lstm_forward_pallas(x, packed)
    out = jax.block_until_ready(out)

    ref = ref_forward(x, raw)
    assert out.shape == (B, OUTPUT_DIM)
    np.testing.assert_allclose(np.asarray(out), np.asarray(ref),
                               rtol=1e-4, atol=1e-5)
    print("KERNEL_OK")
</pallas_src>

<mosaic_0001>
module attributes {stable_mosaic.version = 11 : i64} {
  func.func @lstm_wave_kernel(%arg0: memref<8x2x128xf32, #tpu.memory_space<vmem>>, %arg1: memref<32x128xf32, #tpu.memory_space<vmem>>, %arg2: memref<2x64x128xf32, #tpu.memory_space<vmem>>, %arg3: memref<2x1x128xf32, #tpu.memory_space<vmem>>, %arg4: memref<32x1xf32, #tpu.memory_space<vmem>>, %arg5: memref<1x1xf32, #tpu.memory_space<vmem>>, %arg6: memref<2x1xf32, #tpu.memory_space<vmem>>) attributes {dimension_semantics = [], scalar_prefetch = 0 : i64, scratch_operands = 0 : i64, tpu.core_type = #tpu.core_type<tc>} {
    %c0 = arith.constant 0 : index
    %c0_0 = arith.constant 0 : index
    %0 = vector.load %arg1[%c0, %c0_0] : memref<32x128xf32, #tpu.memory_space<vmem>>, vector<32x128xf32>
    %c0_1 = arith.constant 0 : index
    %c0_2 = arith.constant 0 : index
    %c0_3 = arith.constant 0 : index
    %1 = vector.load %arg2[%c0_1, %c0_2, %c0_3] : memref<2x64x128xf32, #tpu.memory_space<vmem>>, vector<1x64x128xf32>
    %2 = vector.shape_cast %1 : vector<1x64x128xf32> to vector<64x128xf32>
    %c1 = arith.constant 1 : index
    %c0_4 = arith.constant 0 : index
    %c0_5 = arith.constant 0 : index
    %3 = vector.load %arg2[%c1, %c0_4, %c0_5] : memref<2x64x128xf32, #tpu.memory_space<vmem>>, vector<1x64x128xf32>
    %4 = vector.shape_cast %3 : vector<1x64x128xf32> to vector<64x128xf32>
    %c0_6 = arith.constant 0 : index
    %c0_7 = arith.constant 0 : index
    %c0_8 = arith.constant 0 : index
    %5 = vector.load %arg3[%c0_6, %c0_7, %c0_8] : memref<2x1x128xf32, #tpu.memory_space<vmem>>, vector<1x1x128xf32>
    %6 = vector.shape_cast %5 : vector<1x1x128xf32> to vector<1x128xf32>
    %7 = vector.shape_cast %6 : vector<1x128xf32> to vector<1x128xf32>
    %8 = vector.broadcast %7 : vector<1x128xf32> to vector<2x128xf32>
    %c1_9 = arith.constant 1 : index
    %c0_10 = arith.constant 0 : index
    %c0_11 = arith.constant 0 : index
    %9 = vector.load %arg3[%c1_9, %c0_10, %c0_11] : memref<2x1x128xf32, #tpu.memory_space<vmem>>, vector<1x1x128xf32>
    %10 = vector.shape_cast %9 : vector<1x1x128xf32> to vector<1x128xf32>
    %11 = vector.shape_cast %10 : vector<1x128xf32> to vector<1x128xf32>
    %12 = vector.broadcast %11 : vector<1x128xf32> to vector<2x128xf32>
    %cst = arith.constant 0.000000e+00 : f32
    %13 = vector.broadcast %cst : f32 to vector<2x32xf32>
    %c0_12 = arith.constant 0 : index
    %c0_13 = arith.constant 0 : index
    %c0_14 = arith.constant 0 : index
    %14 = vector.load %arg0[%c0_12, %c0_13, %c0_14] : memref<8x2x128xf32, #tpu.memory_space<vmem>>, vector<1x2x128xf32>
    %15 = vector.shape_cast %14 : vector<1x2x128xf32> to vector<2x128xf32>
    %cst_15 = arith.constant dense<0.000000e+00> : vector<2x128xf32>
    %16 = tpu.matmul %13, %0, %cst_15 {dimension_numbers = #tpu.dot_dimension_numbers<[1], [0], [0], [1], [0, 0, 1, 1], [], []>} : vector<2x32xf32>, vector<32x128xf32>, vector<2x128xf32> -> vector<2x128xf32>
    %17 = arith.addf %15, %16 : vector<2x128xf32>
    %18 = arith.negf %17 : vector<2x128xf32>
    %19 = math.exp %18 : vector<2x128xf32>
    %cst_16 = arith.constant 1.000000e+00 : f32
    %20 = vector.broadcast %cst_16 : f32 to vector<2x128xf32>
    %21 = arith.addf %20, %19 : vector<2x128xf32>
    %22 = arith.divf %20, %21 : vector<2x128xf32>
    %23 = math.tanh %17 : vector<2x128xf32>
    %24 = vector.extract_strided_slice %22 {offsets = [0, 0], sizes = [2, 32], strides = [1, 1]} : vector<2x128xf32> to vector<2x32xf32>
    %25 = vector.extract_strided_slice %22 {offsets = [0, 32], sizes = [2, 32], strides = [1, 1]} : vector<2x128xf32> to vector<2x32xf32>
    %26 = vector.extract_strided_slice %23 {offsets = [0, 64], sizes = [2, 32], strides = [1, 1]} : vector<2x128xf32> to vector<2x32xf32>
    %27 = vector.extract_strided_slice %22 {offsets = [0, 96], sizes = [2, 32], strides = [1, 1]} : vector<2x128xf32> to vector<2x32xf32>
    %28 = arith.mulf %25, %13 : vector<2x32xf32>
    %29 = arith.mulf %24, %26 : vector<2x32xf32>
    %30 = arith.addf %28, %29 : vector<2x32xf32>
    %31 = math.tanh %30 : vector<2x32xf32>
    %32 = arith.mulf %27, %31 : vector<2x32xf32>
    %c1_17 = arith.constant 1 : index
    %c0_18 = arith.constant 0 : index
    %c0_19 = arith.constant 0 : index
    %33 = vector.load %arg0[%c1_17, %c0_18, %c0_19] : memref<8x2x128xf32, #tpu.memory_space<vmem>>, vector<1x2x128xf32>
    %34 = vector.shape_cast %33 : vector<1x2x128xf32> to vector<2x128xf32>
    %cst_20 = arith.constant dense<0.000000e+00> : vector<2x128xf32>
    %35 = tpu.matmul %32, %0, %cst_20 {dimension_numbers = #tpu.dot_dimension_numbers<[1], [0], [0], [1], [0, 0, 1, 1], [], []>} : vector<2x32xf32>, vector<32x128xf32>, vector<2x128xf32> -> vector<2x128xf32>
    %36 = arith.addf %34, %35 : vector<2x128xf32>
    %37 = arith.negf %36 : vector<2x128xf32>
    %38 = math.exp %37 : vector<2x128xf32>
    %cst_21 = arith.constant 1.000000e+00 : f32
    %39 = vector.broadcast %cst_21 : f32 to vector<2x128xf32>
    %40 = arith.addf %39, %38 : vector<2x128xf32>
    %41 = arith.divf %39, %40 : vector<2x128xf32>
    %42 = math.tanh %36 : vector<2x128xf32>
    %43 = vector.extract_strided_slice %41 {offsets = [0, 0], sizes = [2, 32], strides = [1, 1]} : vector<2x128xf32> to vector<2x32xf32>
    %44 = vector.extract_strided_slice %41 {offsets = [0, 32], sizes = [2, 32], strides = [1, 1]} : vector<2x128xf32> to vector<2x32xf32>
    %45 = vector.extract_strided_slice %42 {offsets = [0, 64], sizes = [2, 32], strides = [1, 1]} : vector<2x128xf32> to vector<2x32xf32>
    %46 = vector.extract_strided_slice %41 {offsets = [0, 96], sizes = [2, 32], strides = [1, 1]} : vector<2x128xf32> to vector<2x32xf32>
    %47 = arith.mulf %44, %30 : vector<2x32xf32>
    %48 = arith.mulf %43, %45 : vector<2x32xf32>
    %49 = arith.addf %47, %48 : vector<2x32xf32>
    %50 = math.tanh %49 : vector<2x32xf32>
    %51 = arith.mulf %46, %50 : vector<2x32xf32>
    %52 = tpu.concatenate %32, %13 in 1 : vector<2x32xf32>, vector<2x32xf32> -> vector<2x64xf32>
    %cst_22 = arith.constant dense<0.000000e+00> : vector<2x128xf32>
    %53 = tpu.matmul %52, %2, %cst_22 {dimension_numbers = #tpu.dot_dimension_numbers<[1], [0], [0], [1], [0, 0, 1, 1], [], []>} : vector<2x64xf32>, vector<64x128xf32>, vector<2x128xf32> -> vector<2x128xf32>
    %54 = arith.addf %53, %8 : vector<2x128xf32>
    %55 = arith.negf %54 : vector<2x128xf32>
    %56 = math.exp %55 : vector<2x128xf32>
    %cst_23 = arith.constant 1.000000e+00 : f32
    %57 = vector.broadcast %cst_23 : f32 to vector<2x128xf32>
    %58 = arith.addf %57, %56 : vector<2x128xf32>
    %59 = arith.divf %57, %58 : vector<2x128xf32>
    %60 = math.tanh %54 : vector<2x128xf32>
    %61 = vector.extract_strided_slice %59 {offsets = [0, 0], sizes = [2, 32], strides = [1, 1]} : vector<2x128xf32> to vector<2x32xf32>
    %62 = vector.extract_strided_slice %59 {offsets = [0, 32], sizes = [2, 32], strides = [1, 1]} : vector<2x128xf32> to vector<2x32xf32>
    %63 = vector.extract_strided_slice %60 {offsets = [0, 64], sizes = [2, 32], strides = [1, 1]} : vector<2x128xf32> to vector<2x32xf32>
    %64 = vector.extract_strided_slice %59 {offsets = [0, 96], sizes = [2, 32], strides = [1, 1]} : vector<2x128xf32> to vector<2x32xf32>
    %65 = arith.mulf %62, %13 : vector<2x32xf32>
    %66 = arith.mulf %61, %63 : vector<2x32xf32>
    %67 = arith.addf %65, %66 : vector<2x32xf32>
    %68 = math.tanh %67 : vector<2x32xf32>
    %69 = arith.mulf %64, %68 : vector<2x32xf32>
    %c2_i32 = arith.constant 2 : i32
    %70 = arith.index_cast %c2_i32 : i32 to index
    %c0_24 = arith.constant 0 : index
    %c0_25 = arith.constant 0 : index
    %71 = vector.load %arg0[%70, %c0_24, %c0_25] : memref<8x2x128xf32, #tpu.memory_space<vmem>>, vector<1x2x128xf32>
    %72 = vector.shape_cast %71 : vector<1x2x128xf32> to vector<2x128xf32>
    %cst_26 = arith.constant dense<0.000000e+00> : vector<2x128xf32>
    %73 = tpu.matmul %51, %0, %cst_26 {dimension_numbers = #tpu.dot_dimension_numbers<[1], [0], [0], [1], [0, 0, 1, 1], [], []>} : vector<2x32xf32>, vector<32x128xf32>, vector<2x128xf32> -> vector<2x128xf32>
    %74 = arith.addf %72, %73 : vector<2x128xf32>
    %75 = arith.negf %74 : vector<2x128xf32>
    %76 = math.exp %75 : vector<2x128xf32>
    %cst_27 = arith.constant 1.000000e+00 : f32
    %77 = vector.broadcast %cst_27 : f32 to vector<2x128xf32>
    %78 = arith.addf %77, %76 : vector<2x128xf32>
    %79 = arith.divf %77, %78 : vector<2x128xf32>
    %80 = math.tanh %74 : vector<2x128xf32>
    %81 = vector.extract_strided_slice %79 {offsets = [0, 0], sizes = [2, 32], strides = [1, 1]} : vector<2x128xf32> to vector<2x32xf32>
    %82 = vector.extract_strided_slice %79 {offsets = [0, 32], sizes = [2, 32], strides = [1, 1]} : vector<2x128xf32> to vector<2x32xf32>
    %83 = vector.extract_strided_slice %80 {offsets = [0, 64], sizes = [2, 32], strides = [1, 1]} : vector<2x128xf32> to vector<2x32xf32>
    %84 = vector.extract_strided_slice %79 {offsets = [0, 96], sizes = [2, 32], strides = [1, 1]} : vector<2x128xf32> to vector<2x32xf32>
    %85 = arith.mulf %82, %49 : vector<2x32xf32>
    %86 = arith.mulf %81, %83 : vector<2x32xf32>
    %87 = arith.addf %85, %86 : vector<2x32xf32>
    %88 = math.tanh %87 : vector<2x32xf32>
    %89 = arith.mulf %84, %88 : vector<2x32xf32>
    %90 = tpu.concatenate %51, %69 in 1 : vector<2x32xf32>, vector<2x32xf32> -> vector<2x64xf32>
    %cst_28 = arith.constant dense<0.000000e+00> : vector<2x128xf32>
    %91 = tpu.matmul %90, %2, %cst_28 {dimension_numbers = #tpu.dot_dimension_numbers<[1], [0], [0], [1], [0, 0, 1, 1], [], []>} : vector<2x64xf32>, vector<64x128xf32>, vector<2x128xf32> -> vector<2x128xf32>
    %92 = arith.addf %91, %8 : vector<2x128xf32>
    %93 = arith.negf %92 : vector<2x128xf32>
    %94 = math.exp %93 : vector<2x128xf32>
    %cst_29 = arith.constant 1.000000e+00 : f32
    %95 = vector.broadcast %cst_29 : f32 to vector<2x128xf32>
    %96 = arith.addf %95, %94 : vector<2x128xf32>
    %97 = arith.divf %95, %96 : vector<2x128xf32>
    %98 = math.tanh %92 : vector<2x128xf32>
    %99 = vector.extract_strided_slice %97 {offsets = [0, 0], sizes = [2, 32], strides = [1, 1]} : vector<2x128xf32> to vector<2x32xf32>
    %100 = vector.extract_strided_slice %97 {offsets = [0, 32], sizes = [2, 32], strides = [1, 1]} : vector<2x128xf32> to vector<2x32xf32>
    %101 = vector.extract_strided_slice %98 {offsets = [0, 64], sizes = [2, 32], strides = [1, 1]} : vector<2x128xf32> to vector<2x32xf32>
    %102 = vector.extract_strided_slice %97 {offsets = [0, 96], sizes = [2, 32], strides = [1, 1]} : vector<2x128xf32> to vector<2x32xf32>
    %103 = arith.mulf %100, %67 : vector<2x32xf32>
    %104 = arith.mulf %99, %101 : vector<2x32xf32>
    %105 = arith.addf %103, %104 : vector<2x32xf32>
    %106 = math.tanh %105 : vector<2x32xf32>
    %107 = arith.mulf %102, %106 : vector<2x32xf32>
    %108 = tpu.concatenate %69, %13 in 1 : vector<2x32xf32>, vector<2x32xf32> -> vector<2x64xf32>
    %cst_30 = arith.constant dense<0.000000e+00> : vector<2x128xf32>
    %109 = tpu.matmul %108, %4, %cst_30 {dimension_numbers = #tpu.dot_dimension_numbers<[1], [0], [0], [1], [0, 0, 1, 1], [], []>} : vector<2x64xf32>, vector<64x128xf32>, vector<2x128xf32> -> vector<2x128xf32>
    %110 = arith.addf %109, %12 : vector<2x128xf32>
    %111 = arith.negf %110 : vector<2x128xf32>
    %112 = math.exp %111 : vector<2x128xf32>
    %cst_31 = arith.constant 1.000000e+00 : f32
    %113 = vector.broadcast %cst_31 : f32 to vector<2x128xf32>
    %114 = arith.addf %113, %112 : vector<2x128xf32>
    %115 = arith.divf %113, %114 : vector<2x128xf32>
    %116 = math.tanh %110 : vector<2x128xf32>
    %117 = vector.extract_strided_slice %115 {offsets = [0, 0], sizes = [2, 32], strides = [1, 1]} : vector<2x128xf32> to vector<2x32xf32>
    %118 = vector.extract_strided_slice %115 {offsets = [0, 32], sizes = [2, 32], strides = [1, 1]} : vector<2x128xf32> to vector<2x32xf32>
    %119 = vector.extract_strided_slice %116 {offsets = [0, 64], sizes = [2, 32], strides = [1, 1]} : vector<2x128xf32> to vector<2x32xf32>
    %120 = vector.extract_strided_slice %115 {offsets = [0, 96], sizes = [2, 32], strides = [1, 1]} : vector<2x128xf32> to vector<2x32xf32>
    %121 = arith.mulf %118, %13 : vector<2x32xf32>
    %122 = arith.mulf %117, %119 : vector<2x32xf32>
    %123 = arith.addf %121, %122 : vector<2x32xf32>
    %124 = math.tanh %123 : vector<2x32xf32>
    %125 = arith.mulf %120, %124 : vector<2x32xf32>
    %c3_i32 = arith.constant 3 : i32
    %126 = arith.index_cast %c3_i32 : i32 to index
    %c0_32 = arith.constant 0 : index
    %c0_33 = arith.constant 0 : index
    %127 = vector.load %arg0[%126, %c0_32, %c0_33] : memref<8x2x128xf32, #tpu.memory_space<vmem>>, vector<1x2x128xf32>
    %128 = vector.shape_cast %127 : vector<1x2x128xf32> to vector<2x128xf32>
    %cst_34 = arith.constant dense<0.000000e+00> : vector<2x128xf32>
    %129 = tpu.matmul %89, %0, %cst_34 {dimension_numbers = #tpu.dot_dimension_numbers<[1], [0], [0], [1], [0, 0, 1, 1], [], []>} : vector<2x32xf32>, vector<32x128xf32>, vector<2x128xf32> -> vector<2x128xf32>
    %130 = arith.addf %128, %129 : vector<2x128xf32>
    %131 = arith.negf %130 : vector<2x128xf32>
    %132 = math.exp %131 : vector<2x128xf32>
    %cst_35 = arith.constant 1.000000e+00 : f32
    %133 = vector.broadcast %cst_35 : f32 to vector<2x128xf32>
    %134 = arith.addf %133, %132 : vector<2x128xf32>
    %135 = arith.divf %133, %134 : vector<2x128xf32>
    %136 = math.tanh %130 : vector<2x128xf32>
    %137 = vector.extract_strided_slice %135 {offsets = [0, 0], sizes = [2, 32], strides = [1, 1]} : vector<2x128xf32> to vector<2x32xf32>
    %138 = vector.extract_strided_slice %135 {offsets = [0, 32], sizes = [2, 32], strides = [1, 1]} : vector<2x128xf32> to vector<2x32xf32>
    %139 = vector.extract_strided_slice %136 {offsets = [0, 64], sizes = [2, 32], strides = [1, 1]} : vector<2x128xf32> to vector<2x32xf32>
    %140 = vector.extract_strided_slice %135 {offsets = [0, 96], sizes = [2, 32], strides = [1, 1]} : vector<2x128xf32> to vector<2x32xf32>
    %141 = arith.mulf %138, %87 : vector<2x32xf32>
    %142 = arith.mulf %137, %139 : vector<2x32xf32>
    %143 = arith.addf %141, %142 : vector<2x32xf32>
    %144 = math.tanh %143 : vector<2x32xf32>
    %145 = arith.mulf %140, %144 : vector<2x32xf32>
    %146 = tpu.concatenate %89, %107 in 1 : vector<2x32xf32>, vector<2x32xf32> -> vector<2x64xf32>
    %cst_36 = arith.constant dense<0.000000e+00> : vector<2x128xf32>
    %147 = tpu.matmul %146, %2, %cst_36 {dimension_numbers = #tpu.dot_dimension_numbers<[1], [0], [0], [1], [0, 0, 1, 1], [], []>} : vector<2x64xf32>, vector<64x128xf32>, vector<2x128xf32> -> vector<2x128xf32>
    %148 = arith.addf %147, %8 : vector<2x128xf32>
    %149 = arith.negf %148 : vector<2x128xf32>
    %150 = math.exp %149 : vector<2x128xf32>
    %cst_37 = arith.constant 1.000000e+00 : f32
    %151 = vector.broadcast %cst_37 : f32 to vector<2x128xf32>
    %152 = arith.addf %151, %150 : vector<2x128xf32>
    %153 = arith.divf %151, %152 : vector<2x128xf32>
    %154 = math.tanh %148 : vector<2x128xf32>
    %155 = vector.extract_strided_slice %153 {offsets = [0, 0], sizes = [2, 32], strides = [1, 1]} : vector<2x128xf32> to vector<2x32xf32>
    %156 = vector.extract_strided_slice %153 {offsets = [0, 32], sizes = [2, 32], strides = [1, 1]} : vector<2x128xf32> to vector<2x32xf32>
    %157 = vector.extract_strided_slice %154 {offsets = [0, 64], sizes = [2, 32], strides = [1, 1]} : vector<2x128xf32> to vector<2x32xf32>
    %158 = vector.extract_strided_slice %153 {offsets = [0, 96], sizes = [2, 32], strides = [1, 1]} : vector<2x128xf32> to vector<2x32xf32>
    %159 = arith.mulf %156, %105 : vector<2x32xf32>
    %160 = arith.mulf %155, %157 : vector<2x32xf32>
    %161 = arith.addf %159, %160 : vector<2x32xf32>
    %162 = math.tanh %161 : vector<2x32xf32>
    %163 = arith.mulf %158, %162 : vector<2x32xf32>
    %164 = tpu.concatenate %107, %125 in 1 : vector<2x32xf32>, vector<2x32xf32> -> vector<2x64xf32>
    %cst_38 = arith.constant dense<0.000000e+00> : vector<2x128xf32>
    %165 = tpu.matmul %164, %4, %cst_38 {dimension_numbers = #tpu.dot_dimension_numbers<[1], [0], [0], [1], [0, 0, 1, 1], [], []>} : vector<2x64xf32>, vector<64x128xf32>, vector<2x128xf32> -> vector<2x128xf32>
    %166 = arith.addf %165, %12 : vector<2x128xf32>
    %167 = arith.negf %166 : vector<2x128xf32>
    %168 = math.exp %167 : vector<2x128xf32>
    %cst_39 = arith.constant 1.000000e+00 : f32
    %169 = vector.broadcast %cst_39 : f32 to vector<2x128xf32>
    %170 = arith.addf %169, %168 : vector<2x128xf32>
    %171 = arith.divf %169, %170 : vector<2x128xf32>
    %172 = math.tanh %166 : vector<2x128xf32>
    %173 = vector.extract_strided_slice %171 {offsets = [0, 0], sizes = [2, 32], strides = [1, 1]} : vector<2x128xf32> to vector<2x32xf32>
    %174 = vector.extract_strided_slice %171 {offsets = [0, 32], sizes = [2, 32], strides = [1, 1]} : vector<2x128xf32> to vector<2x32xf32>
    %175 = vector.extract_strided_slice %172 {offsets = [0, 64], sizes = [2, 32], strides = [1, 1]} : vector<2x128xf32> to vector<2x32xf32>
    %176 = vector.extract_strided_slice %171 {offsets = [0, 96], sizes = [2, 32], strides = [1, 1]} : vector<2x128xf32> to vector<2x32xf32>
    %177 = arith.mulf %174, %123 : vector<2x32xf32>
    %178 = arith.mulf %173, %175 : vector<2x32xf32>
    %179 = arith.addf %177, %178 : vector<2x32xf32>
    %180 = math.tanh %179 : vector<2x32xf32>
    %181 = arith.mulf %176, %180 : vector<2x32xf32>
    %c4_i32 = arith.constant 4 : i32
    %182 = arith.index_cast %c4_i32 : i32 to index
    %c0_40 = arith.constant 0 : index
    %c0_41 = arith.constant 0 : index
    %183 = vector.load %arg0[%182, %c0_40, %c0_41] : memref<8x2x128xf32, #tpu.memory_space<vmem>>, vector<1x2x128xf32>
    %184 = vector.shape_cast %183 : vector<1x2x128xf32> to vector<2x128xf32>
    %cst_42 = arith.constant dense<0.000000e+00> : vector<2x128xf32>
    %185 = tpu.matmul %145, %0, %cst_42 {dimension_numbers = #tpu.dot_dimension_numbers<[1], [0], [0], [1], [0, 0, 1, 1], [], []>} : vector<2x32xf32>, vector<32x128xf32>, vector<2x128xf32> -> vector<2x128xf32>
    %186 = arith.addf %184, %185 : vector<2x128xf32>
    %187 = arith.negf %186 : vector<2x128xf32>
    %188 = math.exp %187 : vector<2x128xf32>
    %cst_43 = arith.constant 1.000000e+00 : f32
    %189 = vector.broadcast %cst_43 : f32 to vector<2x128xf32>
    %190 = arith.addf %189, %188 : vector<2x128xf32>
    %191 = arith.divf %189, %190 : vector<2x128xf32>
    %192 = math.tanh %186 : vector<2x128xf32>
    %193 = vector.extract_strided_slice %191 {offsets = [0, 0], sizes = [2, 32], strides = [1, 1]} : vector<2x128xf32> to vector<2x32xf32>
    %194 = vector.extract_strided_slice %191 {offsets = [0, 32], sizes = [2, 32], strides = [1, 1]} : vector<2x128xf32> to vector<2x32xf32>
    %195 = vector.extract_strided_slice %192 {offsets = [0, 64], sizes = [2, 32], strides = [1, 1]} : vector<2x128xf32> to vector<2x32xf32>
    %196 = vector.extract_strided_slice %191 {offsets = [0, 96], sizes = [2, 32], strides = [1, 1]} : vector<2x128xf32> to vector<2x32xf32>
    %197 = arith.mulf %194, %143 : vector<2x32xf32>
    %198 = arith.mulf %193, %195 : vector<2x32xf32>
    %199 = arith.addf %197, %198 : vector<2x32xf32>
    %200 = math.tanh %199 : vector<2x32xf32>
    %201 = arith.mulf %196, %200 : vector<2x32xf32>
    %202 = tpu.concatenate %145, %163 in 1 : vector<2x32xf32>, vector<2x32xf32> -> vector<2x64xf32>
    %cst_44 = arith.constant dense<0.000000e+00> : vector<2x128xf32>
    %203 = tpu.matmul %202, %2, %cst_44 {dimension_numbers = #tpu.dot_dimension_numbers<[1], [0], [0], [1], [0, 0, 1, 1], [], []>} : vector<2x64xf32>, vector<64x128xf32>, vector<2x128xf32> -> vector<2x128xf32>
    %204 = arith.addf %203, %8 : vector<2x128xf32>
    %205 = arith.negf %204 : vector<2x128xf32>
    %206 = math.exp %205 : vector<2x128xf32>
    %cst_45 = arith.constant 1.000000e+00 : f32
    %207 = vector.broadcast %cst_45 : f32 to vector<2x128xf32>
    %208 = arith.addf %207, %206 : vector<2x128xf32>
    %209 = arith.divf %207, %208 : vector<2x128xf32>
    %210 = math.tanh %204 : vector<2x128xf32>
    %211 = vector.extract_strided_slice %209 {offsets = [0, 0], sizes = [2, 32], strides = [1, 1]} : vector<2x128xf32> to vector<2x32xf32>
    %212 = vector.extract_strided_slice %209 {offsets = [0, 32], sizes = [2, 32], strides = [1, 1]} : vector<2x128xf32> to vector<2x32xf32>
    %213 = vector.extract_strided_slice %210 {offsets = [0, 64], sizes = [2, 32], strides = [1, 1]} : vector<2x128xf32> to vector<2x32xf32>
    %214 = vector.extract_strided_slice %209 {offsets = [0, 96], sizes = [2, 32], strides = [1, 1]} : vector<2x128xf32> to vector<2x32xf32>
    %215 = arith.mulf %212, %161 : vector<2x32xf32>
    %216 = arith.mulf %211, %213 : vector<2x32xf32>
    %217 = arith.addf %215, %216 : vector<2x32xf32>
    %218 = math.tanh %217 : vector<2x32xf32>
    %219 = arith.mulf %214, %218 : vector<2x32xf32>
    %220 = tpu.concatenate %163, %181 in 1 : vector<2x32xf32>, vector<2x32xf32> -> vector<2x64xf32>
    %cst_46 = arith.constant dense<0.000000e+00> : vector<2x128xf32>
    %221 = tpu.matmul %220, %4, %cst_46 {dimension_numbers = #tpu.dot_dimension_numbers<[1], [0], [0], [1], [0, 0, 1, 1], [], []>} : vector<2x64xf32>, vector<64x128xf32>, vector<2x128xf32> -> vector<2x128xf32>
    %222 = arith.addf %221, %12 : vector<2x128xf32>
    %223 = arith.negf %222 : vector<2x128xf32>
    %224 = math.exp %223 : vector<2x128xf32>
    %cst_47 = arith.constant 1.000000e+00 : f32
    %225 = vector.broadcast %cst_47 : f32 to vector<2x128xf32>
    %226 = arith.addf %225, %224 : vector<2x128xf32>
    %227 = arith.divf %225, %226 : vector<2x128xf32>
    %228 = math.tanh %222 : vector<2x128xf32>
    %229 = vector.extract_strided_slice %227 {offsets = [0, 0], sizes = [2, 32], strides = [1, 1]} : vector<2x128xf32> to vector<2x32xf32>
    %230 = vector.extract_strided_slice %227 {offsets = [0, 32], sizes = [2, 32], strides = [1, 1]} : vector<2x128xf32> to vector<2x32xf32>
    %231 = vector.extract_strided_slice %228 {offsets = [0, 64], sizes = [2, 32], strides = [1, 1]} : vector<2x128xf32> to vector<2x32xf32>
    %232 = vector.extract_strided_slice %227 {offsets = [0, 96], sizes = [2, 32], strides = [1, 1]} : vector<2x128xf32> to vector<2x32xf32>
    %233 = arith.mulf %230, %179 : vector<2x32xf32>
    %234 = arith.mulf %229, %231 : vector<2x32xf32>
    %235 = arith.addf %233, %234 : vector<2x32xf32>
    %236 = math.tanh %235 : vector<2x32xf32>
    %237 = arith.mulf %232, %236 : vector<2x32xf32>
    %c5_i32 = arith.constant 5 : i32
    %238 = arith.index_cast %c5_i32 : i32 to index
    %c0_48 = arith.constant 0 : index
    %c0_49 = arith.constant 0 : index
    %239 = vector.load %arg0[%238, %c0_48, %c0_49] : memref<8x2x128xf32, #tpu.memory_space<vmem>>, vector<1x2x128xf32>
    %240 = vector.shape_cast %239 : vector<1x2x128xf32> to vector<2x128xf32>
    %cst_50 = arith.constant dense<0.000000e+00> : vector<2x128xf32>
    %241 = tpu.matmul %201, %0, %cst_50 {dimension_numbers = #tpu.dot_dimension_numbers<[1], [0], [0], [1], [0, 0, 1, 1], [], []>} : vector<2x32xf32>, vector<32x128xf32>, vector<2x128xf32> -> vector<2x128xf32>
    %242 = arith.addf %240, %241 : vector<2x128xf32>
    %243 = arith.negf %242 : vector<2x128xf32>
    %244 = math.exp %243 : vector<2x128xf32>
    %cst_51 = arith.constant 1.000000e+00 : f32
    %245 = vector.broadcast %cst_51 : f32 to vector<2x128xf32>
    %246 = arith.addf %245, %244 : vector<2x128xf32>
    %247 = arith.divf %245, %246 : vector<2x128xf32>
    %248 = math.tanh %242 : vector<2x128xf32>
    %249 = vector.extract_strided_slice %247 {offsets = [0, 0], sizes = [2, 32], strides = [1, 1]} : vector<2x128xf32> to vector<2x32xf32>
    %250 = vector.extract_strided_slice %247 {offsets = [0, 32], sizes = [2, 32], strides = [1, 1]} : vector<2x128xf32> to vector<2x32xf32>
    %251 = vector.extract_strided_slice %248 {offsets = [0, 64], sizes = [2, 32], strides = [1, 1]} : vector<2x128xf32> to vector<2x32xf32>
    %252 = vector.extract_strided_slice %247 {offsets = [0, 96], sizes = [2, 32], strides = [1, 1]} : vector<2x128xf32> to vector<2x32xf32>
    %253 = arith.mulf %250, %199 : vector<2x32xf32>
    %254 = arith.mulf %249, %251 : vector<2x32xf32>
    %255 = arith.addf %253, %254 : vector<2x32xf32>
    %256 = math.tanh %255 : vector<2x32xf32>
    %257 = arith.mulf %252, %256 : vector<2x32xf32>
    %258 = tpu.concatenate %201, %219 in 1 : vector<2x32xf32>, vector<2x32xf32> -> vector<2x64xf32>
    %cst_52 = arith.constant dense<0.000000e+00> : vector<2x128xf32>
    %259 = tpu.matmul %258, %2, %cst_52 {dimension_numbers = #tpu.dot_dimension_numbers<[1], [0], [0], [1], [0, 0, 1, 1], [], []>} : vector<2x64xf32>, vector<64x128xf32>, vector<2x128xf32> -> vector<2x128xf32>
    %260 = arith.addf %259, %8 : vector<2x128xf32>
    %261 = arith.negf %260 : vector<2x128xf32>
    %262 = math.exp %261 : vector<2x128xf32>
    %cst_53 = arith.constant 1.000000e+00 : f32
    %263 = vector.broadcast %cst_53 : f32 to vector<2x128xf32>
    %264 = arith.addf %263, %262 : vector<2x128xf32>
    %265 = arith.divf %263, %264 : vector<2x128xf32>
    %266 = math.tanh %260 : vector<2x128xf32>
    %267 = vector.extract_strided_slice %265 {offsets = [0, 0], sizes = [2, 32], strides = [1, 1]} : vector<2x128xf32> to vector<2x32xf32>
    %268 = vector.extract_strided_slice %265 {offsets = [0, 32], sizes = [2, 32], strides = [1, 1]} : vector<2x128xf32> to vector<2x32xf32>
    %269 = vector.extract_strided_slice %266 {offsets = [0, 64], sizes = [2, 32], strides = [1, 1]} : vector<2x128xf32> to vector<2x32xf32>
    %270 = vector.extract_strided_slice %265 {offsets = [0, 96], sizes = [2, 32], strides = [1, 1]} : vector<2x128xf32> to vector<2x32xf32>
    %271 = arith.mulf %268, %217 : vector<2x32xf32>
    %272 = arith.mulf %267, %269 : vector<2x32xf32>
    %273 = arith.addf %271, %272 : vector<2x32xf32>
    %274 = math.tanh %273 : vector<2x32xf32>
    %275 = arith.mulf %270, %274 : vector<2x32xf32>
    %276 = tpu.concatenate %219, %237 in 1 : vector<2x32xf32>, vector<2x32xf32> -> vector<2x64xf32>
    %cst_54 = arith.constant dense<0.000000e+00> : vector<2x128xf32>
    %277 = tpu.matmul %276, %4, %cst_54 {dimension_numbers = #tpu.dot_dimension_numbers<[1], [0], [0], [1], [0, 0, 1, 1], [], []>} : vector<2x64xf32>, vector<64x128xf32>, vector<2x128xf32> -> vector<2x128xf32>
    %278 = arith.addf %277, %12 : vector<2x128xf32>
    %279 = arith.negf %278 : vector<2x128xf32>
    %280 = math.exp %279 : vector<2x128xf32>
    %cst_55 = arith.constant 1.000000e+00 : f32
    %281 = vector.broadcast %cst_55 : f32 to vector<2x128xf32>
    %282 = arith.addf %281, %280 : vector<2x128xf32>
    %283 = arith.divf %281, %282 : vector<2x128xf32>
    %284 = math.tanh %278 : vector<2x128xf32>
    %285 = vector.extract_strided_slice %283 {offsets = [0, 0], sizes = [2, 32], strides = [1, 1]} : vector<2x128xf32> to vector<2x32xf32>
    %286 = vector.extract_strided_slice %283 {offsets = [0, 32], sizes = [2, 32], strides = [1, 1]} : vector<2x128xf32> to vector<2x32xf32>
    %287 = vector.extract_strided_slice %284 {offsets = [0, 64], sizes = [2, 32], strides = [1, 1]} : vector<2x128xf32> to vector<2x32xf32>
    %288 = vector.extract_strided_slice %283 {offsets = [0, 96], sizes = [2, 32], strides = [1, 1]} : vector<2x128xf32> to vector<2x32xf32>
    %289 = arith.mulf %286, %235 : vector<2x32xf32>
    %290 = arith.mulf %285, %287 : vector<2x32xf32>
    %291 = arith.addf %289, %290 : vector<2x32xf32>
    %292 = math.tanh %291 : vector<2x32xf32>
    %293 = arith.mulf %288, %292 : vector<2x32xf32>
    %c6_i32 = arith.constant 6 : i32
    %294 = arith.index_cast %c6_i32 : i32 to index
    %c0_56 = arith.constant 0 : index
    %c0_57 = arith.constant 0 : index
    %295 = vector.load %arg0[%294, %c0_56, %c0_57] : memref<8x2x128xf32, #tpu.memory_space<vmem>>, vector<1x2x128xf32>
    %296 = vector.shape_cast %295 : vector<1x2x128xf32> to vector<2x128xf32>
    %cst_58 = arith.constant dense<0.000000e+00> : vector<2x128xf32>
    %297 = tpu.matmul %257, %0, %cst_58 {dimension_numbers = #tpu.dot_dimension_numbers<[1], [0], [0], [1], [0, 0, 1, 1], [], []>} : vector<2x32xf32>, vector<32x128xf32>, vector<2x128xf32> -> vector<2x128xf32>
    %298 = arith.addf %296, %297 : vector<2x128xf32>
    %299 = arith.negf %298 : vector<2x128xf32>
    %300 = math.exp %299 : vector<2x128xf32>
    %cst_59 = arith.constant 1.000000e+00 : f32
    %301 = vector.broadcast %cst_59 : f32 to vector<2x128xf32>
    %302 = arith.addf %301, %300 : vector<2x128xf32>
    %303 = arith.divf %301, %302 : vector<2x128xf32>
    %304 = math.tanh %298 : vector<2x128xf32>
    %305 = vector.extract_strided_slice %303 {offsets = [0, 0], sizes = [2, 32], strides = [1, 1]} : vector<2x128xf32> to vector<2x32xf32>
    %306 = vector.extract_strided_slice %303 {offsets = [0, 32], sizes = [2, 32], strides = [1, 1]} : vector<2x128xf32> to vector<2x32xf32>
    %307 = vector.extract_strided_slice %304 {offsets = [0, 64], sizes = [2, 32], strides = [1, 1]} : vector<2x128xf32> to vector<2x32xf32>
    %308 = vector.extract_strided_slice %303 {offsets = [0, 96], sizes = [2, 32], strides = [1, 1]} : vector<2x128xf32> to vector<2x32xf32>
    %309 = arith.mulf %306, %255 : vector<2x32xf32>
    %310 = arith.mulf %305, %307 : vector<2x32xf32>
    %311 = arith.addf %309, %310 : vector<2x32xf32>
    %312 = math.tanh %311 : vector<2x32xf32>
    %313 = arith.mulf %308, %312 : vector<2x32xf32>
    %314 = tpu.concatenate %257, %275 in 1 : vector<2x32xf32>, vector<2x32xf32> -> vector<2x64xf32>
    %cst_60 = arith.constant dense<0.000000e+00> : vector<2x128xf32>
    %315 = tpu.matmul %314, %2, %cst_60 {dimension_numbers = #tpu.dot_dimension_numbers<[1], [0], [0], [1], [0, 0, 1, 1], [], []>} : vector<2x64xf32>, vector<64x128xf32>, vector<2x128xf32> -> vector<2x128xf32>
    %316 = arith.addf %315, %8 : vector<2x128xf32>
    %317 = arith.negf %316 : vector<2x128xf32>
    %318 = math.exp %317 : vector<2x128xf32>
    %cst_61 = arith.constant 1.000000e+00 : f32
    %319 = vector.broadcast %cst_61 : f32 to vector<2x128xf32>
    %320 = arith.addf %319, %318 : vector<2x128xf32>
    %321 = arith.divf %319, %320 : vector<2x128xf32>
    %322 = math.tanh %316 : vector<2x128xf32>
    %323 = vector.extract_strided_slice %321 {offsets = [0, 0], sizes = [2, 32], strides = [1, 1]} : vector<2x128xf32> to vector<2x32xf32>
    %324 = vector.extract_strided_slice %321 {offsets = [0, 32], sizes = [2, 32], strides = [1, 1]} : vector<2x128xf32> to vector<2x32xf32>
    %325 = vector.extract_strided_slice %322 {offsets = [0, 64], sizes = [2, 32], strides = [1, 1]} : vector<2x128xf32> to vector<2x32xf32>
    %326 = vector.extract_strided_slice %321 {offsets = [0, 96], sizes = [2, 32], strides = [1, 1]} : vector<2x128xf32> to vector<2x32xf32>
    %327 = arith.mulf %324, %273 : vector<2x32xf32>
    %328 = arith.mulf %323, %325 : vector<2x32xf32>
    %329 = arith.addf %327, %328 : vector<2x32xf32>
    %330 = math.tanh %329 : vector<2x32xf32>
    %331 = arith.mulf %326, %330 : vector<2x32xf32>
    %332 = tpu.concatenate %275, %293 in 1 : vector<2x32xf32>, vector<2x32xf32> -> vector<2x64xf32>
    %cst_62 = arith.constant dense<0.000000e+00> : vector<2x128xf32>
    %333 = tpu.matmul %332, %4, %cst_62 {dimension_numbers = #tpu.dot_dimension_numbers<[1], [0], [0], [1], [0, 0, 1, 1], [], []>} : vector<2x64xf32>, vector<64x128xf32>, vector<2x128xf32> -> vector<2x128xf32>
    %334 = arith.addf %333, %12 : vector<2x128xf32>
    %335 = arith.negf %334 : vector<2x128xf32>
    %336 = math.exp %335 : vector<2x128xf32>
    %cst_63 = arith.constant 1.000000e+00 : f32
    %337 = vector.broadcast %cst_63 : f32 to vector<2x128xf32>
    %338 = arith.addf %337, %336 : vector<2x128xf32>
    %339 = arith.divf %337, %338 : vector<2x128xf32>
    %340 = math.tanh %334 : vector<2x128xf32>
    %341 = vector.extract_strided_slice %339 {offsets = [0, 0], sizes = [2, 32], strides = [1, 1]} : vector<2x128xf32> to vector<2x32xf32>
    %342 = vector.extract_strided_slice %339 {offsets = [0, 32], sizes = [2, 32], strides = [1, 1]} : vector<2x128xf32> to vector<2x32xf32>
    %343 = vector.extract_strided_slice %340 {offsets = [0, 64], sizes = [2, 32], strides = [1, 1]} : vector<2x128xf32> to vector<2x32xf32>
    %344 = vector.extract_strided_slice %339 {offsets = [0, 96], sizes = [2, 32], strides = [1, 1]} : vector<2x128xf32> to vector<2x32xf32>
    %345 = arith.mulf %342, %291 : vector<2x32xf32>
    %346 = arith.mulf %341, %343 : vector<2x32xf32>
    %347 = arith.addf %345, %346 : vector<2x32xf32>
    %348 = math.tanh %347 : vector<2x32xf32>
    %349 = arith.mulf %344, %348 : vector<2x32xf32>
    %c7_i32 = arith.constant 7 : i32
    %350 = arith.index_cast %c7_i32 : i32 to index
    %c0_64 = arith.constant 0 : index
    %c0_65 = arith.constant 0 : index
    %351 = vector.load %arg0[%350, %c0_64, %c0_65] : memref<8x2x128xf32, #tpu.memory_space<vmem>>, vector<1x2x128xf32>
    %352 = vector.shape_cast %351 : vector<1x2x128xf32> to vector<2x128xf32>
    %cst_66 = arith.constant dense<0.000000e+00> : vector<2x128xf32>
    %353 = tpu.matmul %313, %0, %cst_66 {dimension_numbers = #tpu.dot_dimension_numbers<[1], [0], [0], [1], [0, 0, 1, 1], [], []>} : vector<2x32xf32>, vector<32x128xf32>, vector<2x128xf32> -> vector<2x128xf32>
    %354 = arith.addf %352, %353 : vector<2x128xf32>
    %355 = arith.negf %354 : vector<2x128xf32>
    %356 = math.exp %355 : vector<2x128xf32>
    %cst_67 = arith.constant 1.000000e+00 : f32
    %357 = vector.broadcast %cst_67 : f32 to vector<2x128xf32>
    %358 = arith.addf %357, %356 : vector<2x128xf32>
    %359 = arith.divf %357, %358 : vector<2x128xf32>
    %360 = math.tanh %354 : vector<2x128xf32>
    %361 = vector.extract_strided_slice %359 {offsets = [0, 0], sizes = [2, 32], strides = [1, 1]} : vector<2x128xf32> to vector<2x32xf32>
    %362 = vector.extract_strided_slice %359 {offsets = [0, 32], sizes = [2, 32], strides = [1, 1]} : vector<2x128xf32> to vector<2x32xf32>
    %363 = vector.extract_strided_slice %360 {offsets = [0, 64], sizes = [2, 32], strides = [1, 1]} : vector<2x128xf32> to vector<2x32xf32>
    %364 = vector.extract_strided_slice %359 {offsets = [0, 96], sizes = [2, 32], strides = [1, 1]} : vector<2x128xf32> to vector<2x32xf32>
    %365 = arith.mulf %362, %311 : vector<2x32xf32>
    %366 = arith.mulf %361, %363 : vector<2x32xf32>
    %367 = arith.addf %365, %366 : vector<2x32xf32>
    %368 = math.tanh %367 : vector<2x32xf32>
    %369 = arith.mulf %364, %368 : vector<2x32xf32>
    %370 = tpu.concatenate %313, %331 in 1 : vector<2x32xf32>, vector<2x32xf32> -> vector<2x64xf32>
    %cst_68 = arith.constant dense<0.000000e+00> : vector<2x128xf32>
    %371 = tpu.matmul %370, %2, %cst_68 {dimension_numbers = #tpu.dot_dimension_numbers<[1], [0], [0], [1], [0, 0, 1, 1], [], []>} : vector<2x64xf32>, vector<64x128xf32>, vector<2x128xf32> -> vector<2x128xf32>
    %372 = arith.addf %371, %8 : vector<2x128xf32>
    %373 = arith.negf %372 : vector<2x128xf32>
    %374 = math.exp %373 : vector<2x128xf32>
    %cst_69 = arith.constant 1.000000e+00 : f32
    %375 = vector.broadcast %cst_69 : f32 to vector<2x128xf32>
    %376 = arith.addf %375, %374 : vector<2x128xf32>
    %377 = arith.divf %375, %376 : vector<2x128xf32>
    %378 = math.tanh %372 : vector<2x128xf32>
    %379 = vector.extract_strided_slice %377 {offsets = [0, 0], sizes = [2, 32], strides = [1, 1]} : vector<2x128xf32> to vector<2x32xf32>
    %380 = vector.extract_strided_slice %377 {offsets = [0, 32], sizes = [2, 32], strides = [1, 1]} : vector<2x128xf32> to vector<2x32xf32>
    %381 = vector.extract_strided_slice %378 {offsets = [0, 64], sizes = [2, 32], strides = [1, 1]} : vector<2x128xf32> to vector<2x32xf32>
    %382 = vector.extract_strided_slice %377 {offsets = [0, 96], sizes = [2, 32], strides = [1, 1]} : vector<2x128xf32> to vector<2x32xf32>
    %383 = arith.mulf %380, %329 : vector<2x32xf32>
    %384 = arith.mulf %379, %381 : vector<2x32xf32>
    %385 = arith.addf %383, %384 : vector<2x32xf32>
    %386 = math.tanh %385 : vector<2x32xf32>
    %387 = arith.mulf %382, %386 : vector<2x32xf32>
    %388 = tpu.concatenate %331, %349 in 1 : vector<2x32xf32>, vector<2x32xf32> -> vector<2x64xf32>
    %cst_70 = arith.constant dense<0.000000e+00> : vector<2x128xf32>
    %389 = tpu.matmul %388, %4, %cst_70 {dimension_numbers = #tpu.dot_dimension_numbers<[1], [0], [0], [1], [0, 0, 1, 1], [], []>} : vector<2x64xf32>, vector<64x128xf32>, vector<2x128xf32> -> vector<2x128xf32>
    %390 = arith.addf %389, %12 : vector<2x128xf32>
    %391 = arith.negf %390 : vector<2x128xf32>
    %392 = math.exp %391 : vector<2x128xf32>
    %cst_71 = arith.constant 1.000000e+00 : f32
    %393 = vector.broadcast %cst_71 : f32 to vector<2x128xf32>
    %394 = arith.addf %393, %392 : vector<2x128xf32>
    %395 = arith.divf %393, %394 : vector<2x128xf32>
    %396 = math.tanh %390 : vector<2x128xf32>
    %397 = vector.extract_strided_slice %395 {offsets = [0, 0], sizes = [2, 32], strides = [1, 1]} : vector<2x128xf32> to vector<2x32xf32>
    %398 = vector.extract_strided_slice %395 {offsets = [0, 32], sizes = [2, 32], strides = [1, 1]} : vector<2x128xf32> to vector<2x32xf32>
    %399 = vector.extract_strided_slice %396 {offsets = [0, 64], sizes = [2, 32], strides = [1, 1]} : vector<2x128xf32> to vector<2x32xf32>
    %400 = vector.extract_strided_slice %395 {offsets = [0, 96], sizes = [2, 32], strides = [1, 1]} : vector<2x128xf32> to vector<2x32xf32>
    %401 = arith.mulf %398, %347 : vector<2x32xf32>
    %402 = arith.mulf %397, %399 : vector<2x32xf32>
    %403 = arith.addf %401, %402 : vector<2x32xf32>
    %404 = math.tanh %403 : vector<2x32xf32>
    %405 = arith.mulf %400, %404 : vector<2x32xf32>
    %c6_i32_72 = arith.constant 6 : i32
    %406 = tpu.concatenate %369, %387 in 1 : vector<2x32xf32>, vector<2x32xf32> -> vector<2x64xf32>
    %cst_73 = arith.constant dense<0.000000e+00> : vector<2x128xf32>
    %407 = tpu.matmul %406, %2, %cst_73 {dimension_numbers = #tpu.dot_dimension_numbers<[1], [0], [0], [1], [0, 0, 1, 1], [], []>} : vector<2x64xf32>, vector<64x128xf32>, vector<2x128xf32> -> vector<2x128xf32>
    %408 = arith.addf %407, %8 : vector<2x128xf32>
    %409 = arith.negf %408 : vector<2x128xf32>
    %410 = math.exp %409 : vector<2x128xf32>
    %cst_74 = arith.constant 1.000000e+00 : f32
    %411 = vector.broadcast %cst_74 : f32 to vector<2x128xf32>
    %412 = arith.addf %411, %410 : vector<2x128xf32>
    %413 = arith.divf %411, %412 : vector<2x128xf32>
    %414 = math.tanh %408 : vector<2x128xf32>
    %415 = vector.extract_strided_slice %413 {offsets = [0, 0], sizes = [2, 32], strides = [1, 1]} : vector<2x128xf32> to vector<2x32xf32>
    %416 = vector.extract_strided_slice %413 {offsets = [0, 32], sizes = [2, 32], strides = [1, 1]} : vector<2x128xf32> to vector<2x32xf32>
    %417 = vector.extract_strided_slice %414 {offsets = [0, 64], sizes = [2, 32], strides = [1, 1]} : vector<2x128xf32> to vector<2x32xf32>
    %418 = vector.extract_strided_slice %413 {offsets = [0, 96], sizes = [2, 32], strides = [1, 1]} : vector<2x128xf32> to vector<2x32xf32>
    %419 = arith.mulf %416, %385 : vector<2x32xf32>
    %420 = arith.mulf %415, %417 : vector<2x32xf32>
    %421 = arith.addf %419, %420 : vector<2x32xf32>
    %422 = math.tanh %421 : vector<2x32xf32>
    %423 = arith.mulf %418, %422 : vector<2x32xf32>
    %424 = tpu.concatenate %387, %405 in 1 : vector<2x32xf32>, vector<2x32xf32> -> vector<2x64xf32>
    %cst_75 = arith.constant dense<0.000000e+00> : vector<2x128xf32>
    %425 = tpu.matmul %424, %4, %cst_75 {dimension_numbers = #tpu.dot_dimension_numbers<[1], [0], [0], [1], [0, 0, 1, 1], [], []>} : vector<2x64xf32>, vector<64x128xf32>, vector<2x128xf32> -> vector<2x128xf32>
    %426 = arith.addf %425, %12 : vector<2x128xf32>
    %427 = arith.negf %426 : vector<2x128xf32>
    %428 = math.exp %427 : vector<2x128xf32>
    %cst_76 = arith.constant 1.000000e+00 : f32
    %429 = vector.broadcast %cst_76 : f32 to vector<2x128xf32>
    %430 = arith.addf %429, %428 : vector<2x128xf32>
    %431 = arith.divf %429, %430 : vector<2x128xf32>
    %432 = math.tanh %426 : vector<2x128xf32>
    %433 = vector.extract_strided_slice %431 {offsets = [0, 0], sizes = [2, 32], strides = [1, 1]} : vector<2x128xf32> to vector<2x32xf32>
    %434 = vector.extract_strided_slice %431 {offsets = [0, 32], sizes = [2, 32], strides = [1, 1]} : vector<2x128xf32> to vector<2x32xf32>
    %435 = vector.extract_strided_slice %432 {offsets = [0, 64], sizes = [2, 32], strides = [1, 1]} : vector<2x128xf32> to vector<2x32xf32>
    %436 = vector.extract_strided_slice %431 {offsets = [0, 96], sizes = [2, 32], strides = [1, 1]} : vector<2x128xf32> to vector<2x32xf32>
    %437 = arith.mulf %434, %403 : vector<2x32xf32>
    %438 = arith.mulf %433, %435 : vector<2x32xf32>
    %439 = arith.addf %437, %438 : vector<2x32xf32>
    %440 = math.tanh %439 : vector<2x32xf32>
    %441 = arith.mulf %436, %440 : vector<2x32xf32>
    %442 = tpu.concatenate %423, %441 in 1 : vector<2x32xf32>, vector<2x32xf32> -> vector<2x64xf32>
    %cst_77 = arith.constant dense<0.000000e+00> : vector<2x128xf32>
    %443 = tpu.matmul %442, %4, %cst_77 {dimension_numbers = #tpu.dot_dimension_numbers<[1], [0], [0], [1], [0, 0, 1, 1], [], []>} : vector<2x64xf32>, vector<64x128xf32>, vector<2x128xf32> -> vector<2x128xf32>
    %444 = arith.addf %443, %12 : vector<2x128xf32>
    %445 = arith.negf %444 : vector<2x128xf32>
    %446 = math.exp %445 : vector<2x128xf32>
    %cst_78 = arith.constant 1.000000e+00 : f32
    %447 = vector.broadcast %cst_78 : f32 to vector<2x128xf32>
    %448 = arith.addf %447, %446 : vector<2x128xf32>
    %449 = arith.divf %447, %448 : vector<2x128xf32>
    %450 = math.tanh %444 : vector<2x128xf32>
    %451 = vector.extract_strided_slice %449 {offsets = [0, 0], sizes = [2, 32], strides = [1, 1]} : vector<2x128xf32> to vector<2x32xf32>
    %452 = vector.extract_strided_slice %449 {offsets = [0, 32], sizes = [2, 32], strides = [1, 1]} : vector<2x128xf32> to vector<2x32xf32>
    %453 = vector.extract_strided_slice %450 {offsets = [0, 64], sizes = [2, 32], strides = [1, 1]} : vector<2x128xf32> to vector<2x32xf32>
    %454 = vector.extract_strided_slice %449 {offsets = [0, 96], sizes = [2, 32], strides = [1, 1]} : vector<2x128xf32> to vector<2x32xf32>
    %455 = arith.mulf %452, %439 : vector<2x32xf32>
    %456 = arith.mulf %451, %453 : vector<2x32xf32>
    %457 = arith.addf %455, %456 : vector<2x32xf32>
    %458 = math.tanh %457 : vector<2x32xf32>
    %459 = arith.mulf %454, %458 : vector<2x32xf32>
    %c0_79 = arith.constant 0 : index
    %c0_80 = arith.constant 0 : index
    %460 = vector.load %arg4[%c0_79, %c0_80] : memref<32x1xf32, #tpu.memory_space<vmem>>, vector<32x1xf32>
    %cst_81 = arith.constant dense<0.000000e+00> : vector<2x1xf32>
    %461 = tpu.matmul %459, %460, %cst_81 {dimension_numbers = #tpu.dot_dimension_numbers<[1], [0], [0], [1], [0, 0, 1, 1], [], []>} : vector<2x32xf32>, vector<32x1xf32>, vector<2x1xf32> -> vector<2x1xf32>
    %c0_82 = arith.constant 0 : index
    %c0_83 = arith.constant 0 : index
    %462 = vector.load %arg5[%c0_82, %c0_83] : memref<1x1xf32, #tpu.memory_space<vmem>>, vector<1x1xf32>
    %463 = vector.broadcast %462 : vector<1x1xf32> to vector<2x1xf32>
    %464 = arith.addf %461, %463 : vector<2x1xf32>
    %c0_84 = arith.constant 0 : index
    %c0_85 = arith.constant 0 : index
    %465 = vector.load %arg6[%c0_84, %c0_85] : memref<2x1xf32, #tpu.memory_space<vmem>>, vector<2x1xf32>
    tpu.vector_store %arg6[%c0_84, %c0_85], %464 {strides = array<i32>} : memref<2x1xf32, #tpu.memory_space<vmem>>, vector<2x1xf32>,
    return
  }
}

</mosaic_0001>

<bundles_post_ra>
// kernel: tpu_custom_call.1
= control target key start
LH: loop header
LB: loop body
LE: loop exit
PB: predicated region body
PF: predicated region fallthrough
CT: control target
= control target key end

     0   :  { %s2571_s0 = inlined_call_operand.hbm [shape: f32[8,2,128], index: 0, kind: input, shape index: {}]   ;;  %s2572_s1 = inlined_call_operand.vmem [shape: f32[32,128], index: 1, kind: input, shape index: {}]   ;;  %s2573_s2 = inlined_call_operand.hbm [shape: f32[2,64,128], index: 2, kind: input, shape index: {}]   ;;  %s2574_s3 = inlined_call_operand.vmem [shape: f32[2,1,128], index: 3, kind: input, shape index: {}]   ;;  %s2575_s4 = inlined_call_operand.vmem [shape: f32[32,1], index: 4, kind: input, shape index: {}]   ;;  %s2576_s5 = inlined_call_operand.<no memory space> [shape: f32[1,1], index: 5, kind: input, shape index: {}]   ;;  %s2577_s6 = inlined_call_operand.vmem [shape: f32[2,1], index: 6, kind: output, shape index: {}]  }
   0x1   :  { %v11_v0 = vstv %s2576_s5 }
   0x2   :  { %12 = vst [vmem:[#allocation2] sm:$0x1] %v11_v0 }
   0x3   :  { %13 = vsyncpa [#allocation4], 0  ;;  %s19_s25 = sshll.u32 %s2571_s0, 4  ;;  %s20_s25 = int_to_ptr.hbm [resolvable:$true] %s19_s25 }
   0x4   :  { %14 = vsyncpa [#allocation6], 0  ;;  %s2029_s26 = smov [#allocation3]   ;;  %s34_s30 = sshll.u32 %s2573_s2, 4  ;;  %s35_s30 = int_to_ptr.hbm [resolvable:$true] %s34_s30 }
   0x5   :  { %s21_s27 = sshll.u32 %s2029_s26, 4  ;;  %s2030_s7 = smov 32   ;;  %s22_s27 = int_to_ptr.vmem [resolvable:$true] %s21_s27 }
   0x6   :  { %s2031_s8 = smov 2   ;;  %s2032_s5 = smov [#allocation5]  }
   0x7   :  { %27 = dma.hbm_to_vmem [thread:$0]  %s20_s25, 256, %s22_s27, [#allocation4], %s2030_s7, %s2030_s7, %s2031_s8  }
   0x8   :  { %s36_s9 = sshll.u32 %s2032_s5, 4  ;;  %s2033_s10 = smov 128   ;;  %s37_s9 = int_to_ptr.vmem [resolvable:$true] %s36_s9 }
   0x9   :  { %s2034_s0 = smov 8  }
   0xa   :  { %42 = dma.hbm_to_vmem [thread:$0]  %s35_s30, 2048, %s37_s9, [#allocation6], %s2033_s10, %s2033_s10, %s2034_s0  }
   0xb   :  { %2025 = dma.done.wait [#allocation4], 256  }
   0xc   :  { %2026 = vsyncadd [#allocation4], 4294967040 }
   0xd   :  { %2027 = dma.done.wait [#allocation6], 2048  }
   0xe   :  { %2028 = vsyncadd [#allocation6], 4294965248  ;;  %v2086_v1 = vld [vmem:[%s2572_s1 + $0x18] sm:$0xff]  ;;  %v2091_v2 = vld [vmem:[%s2572_s1 + $0x10] sm:$0xff]  ;;  %v2035_v5 = vmov 0.0   ;;  %vm88_vm4 = vcmask 261120  }
   0xf   :  { %104 = vmatpush.msra.mxu0 %v2086_v1  ;;  %169 = vmatpush.msra.mxu1 %v2086_v1  ;;  %v2098_v3 = vld [vmem:[%s2572_s1 + $0x8] sm:$0xff]  ;;  %v2106_v4 = vld [vmem:[%s2572_s1] sm:$0xff]  ;;  %s2036_s1 = smov 64   ;;  %v2135_v32 = vld [vmem:[#allocation5 + $0x20] sm:$0xff]  ;;  %vm217_vm5 = vcmask 523264  }
  0x10   :  { %297 = vmatpush.msra.mxu3 %v2086_v1  ;;  %v87_v6 = vld [vmem:[#allocation3] sm:$0x3]  ;;  %v2125_v29 = vld [vmem:[#allocation5 + $0x38] sm:$0xff]  ;;  %v2131_v31 = vld [vmem:[#allocation5 + $0x28] sm:$0xff] }
  0x11   :  { %105 = vmatpush.msra.mxu0 %v2091_v2  ;;  %170 = vmatpush.msra.mxu1 %v2091_v2  ;;  %v2127_v30 = vld [vmem:[#allocation5 + $0x30] sm:$0xff]  ;;  %v2139_v33 = vld [vmem:[#allocation5 + $0x18] sm:$0xff]  ;;  %v2147_v35 = vld [vmem:[#allocation5 + $0x8] sm:$0xff] }
  0x12   :  { %298 = vmatpush.msra.mxu3 %v2091_v2  ;;  %229 = vmatpush.msra.mxu2 %v2125_v29  ;;  %v2143_v34 = vld [vmem:[#allocation5 + $0x10] sm:$0xff]  ;;  %v2154_v38 = vld [vmem:[#allocation5] sm:$0xff]  ;;  %v2180_v44 = vld [vmem:[%s2574_s3] ss:$0 sm:$0xff] }
  0x13   :  { %106 = vmatpush.msra.mxu0 %v2098_v3  ;;  %171 = vmatpush.msra.mxu1 %v2098_v3  ;;  %v151_v41 = vld [vmem:[#allocation3 + $0x2] sm:$0x3] }
  0x14   :  { %299 = vmatpush.msra.mxu3 %v2098_v3  ;;  %230 = vmatpush.msra.mxu2 %v2127_v30 }
  0x15   :  { %107 = vmatpush.msra.mxu0 %v2106_v4  ;;  %172 = vmatpush.msra.mxu1 %v2106_v4 }
  0x16   :  { %108 = vmatmul.f32.vlgmr.msra.gmra.mxu0 %v2035_v5  ;;  %300 = vmatpush.msra.mxu3 %v2106_v4 }
  0x17   :  { %360 = vmatpush.msrb.mxu0 %v2125_v29  ;;  %231 = vmatpush.msra.mxu2 %v2131_v31 }
  0x18   :  { %492 = vmatpush.msrb.mxu3 %v2086_v1 }
  0x19   :  { %361 = vmatpush.msrb.mxu0 %v2127_v30  ;;  %232 = vmatpush.msra.mxu2 %v2135_v32 }
  0x1a   :  { %493 = vmatpush.msrb.mxu3 %v2091_v2 }
  0x1b   :  { %362 = vmatpush.msrb.mxu0 %v2131_v31  ;;  %233 = vmatpush.msra.mxu2 %v2139_v33 }
  0x1c   :  { %494 = vmatpush.msrb.mxu3 %v2098_v3 }
  0x1d   :  { %363 = vmatpush.msrb.mxu0 %v2135_v32  ;;  %234 = vmatpush.msra.mxu2 %v2143_v34 }
  0x1e   :  { %495 = vmatpush.msrb.mxu3 %v2106_v4 }
  0x1f   :  { %364 = vmatpush.msrb.mxu0 %v2139_v33  ;;  %235 = vmatpush.msra.mxu2 %v2147_v35 }
  0x21   :  { %365 = vmatpush.msrb.mxu0 %v2143_v34  ;;  %236 = vmatpush.msra.mxu2 %v2154_v38 }
  0x23   :  { %366 = vmatpush.msrb.mxu0 %v2147_v35  ;;  %555 = vmatpush.msrb.mxu2 %v2125_v29 }
  0x25   :  { %367 = vmatpush.msrb.mxu0 %v2154_v38  ;;  %556 = vmatpush.msrb.mxu2 %v2127_v30 }
  0x27   :  { %691 = vmatpush.msra.mxu0 %v2086_v1  ;;  %557 = vmatpush.msrb.mxu2 %v2131_v31 }
  0x29   :  { %692 = vmatpush.msra.mxu0 %v2091_v2  ;;  %558 = vmatpush.msrb.mxu2 %v2135_v32 }
  0x2b   :  { %693 = vmatpush.msra.mxu0 %v2098_v3  ;;  %559 = vmatpush.msrb.mxu2 %v2139_v33 }
  0x2d   :  { %694 = vmatpush.msra.mxu0 %v2106_v4  ;;  %560 = vmatpush.msrb.mxu2 %v2143_v34 }
  0x2f   :  { %561 = vmatpush.msrb.mxu2 %v2147_v35 }
  0x31   :  { %562 = vmatpush.msrb.mxu2 %v2154_v38 }
  0x93   :  { %v109_v7 = vpop.f32.mrf.mxu0 }
  0x94   :  { %v112_v8 = vadd.f32 %v109_v7, %v87_v6 }
  0x96   :  { %1775 = vtanh.f32 %v112_v8  ;;  %v1716_v10 = vmul.f32 -1.442695, %v112_v8 }
  0x98   :  { %1777 = vpow2.f32 %v1716_v10 }
  0x9c   :  { %v1776_v9 = vpop.eup %1775 }
  0x9d   :  { %135 = vrot.lane.b32.xlu0 %v1776_v9, %s2036_s1 }
  0x9e   :  { %v1778_v11 = vpop.eup %1777 }
  0x9f   :  { %v116_v12 = vadd.f32 1.0, %v1778_v11 }
  0xa1   :  { %1779 = vrcp.f32 %v116_v12  ;;  %v128_v18 = vand.u32 2147483648, %v116_v12  ;;  %vm122_vm1 = vweird.f32 %v116_v12  ;;  %v126_v19 = vand.u32 2147483647, %v116_v12 }
  0xa3   :  { %v129_v21 = vor.u32 1.1754944e-38, %v128_v18  ;;  %vm127_vm3 = vcmp.eq.f32.partialorder %v126_v19, 8.507059e+37 }
  0xa7   :  { %v1780_v13 = vpop.eup %1779 }
  0xa8   :  { %v118_v14 = vmul.f32 %v1780_v13, %v116_v12  ;;  %vm123_vm0 = vweird.f32 %v1780_v13 }
  0xa9   :  { %vm124_vm2 = vmor %vm122_vm1, %vm123_vm0 }
  0xaa   :  { %v119_v15 = vsub.f32 1.0, %v118_v14 }
  0xac   :  { %v120_v16 = vmul.f32 %v1780_v13, %v119_v15 }
  0xae   :  { %v121_v17 = vadd.f32 %v1780_v13, %v120_v16 }
  0xb0   :  { %v125_v20 = vsel %vm124_vm2, %v1780_v13, %v121_v17 }
  0xb1   :  { %v130_v23 = vsel %vm127_vm3, %v129_v21, %v125_v20 }
  0xb2   :  { %v133_v25 = vmul.f32 0.0, %v130_v23 }
 0x10f   :  { %v136_v22 = vpop.permute.xlu0 %135 }
 0x110   :  { %v138_v24 = vmul.f32 %v136_v22, %v130_v23 }
 0x112   :  { %140 = vrot.lane.b32.xlu0 %v138_v24, %s2030_s7 }
 0x184   :  { %v141_v26 = vpop.permute.xlu0 %140 }
 0x185   :  { %v2121_v27 = vadd.f32 %v141_v26, %v133_v25 }
 0x187   :  { %1781 = vtanh.f32 %v2121_v27 }
 0x18d   :  { %v1782_v28 = vpop.eup %1781 }
 0x18e   :  { %146 = vrot.lane.b32.xlu1 %v1782_v28, %s2036_s1 }
 0x200   :  { %v147_v36 = vpop.permute.xlu1 %146 }
 0x201   :  { %v149_v37 = vmul.f32 %v147_v36, %v130_v23 }
 0x203   :  { %153 = vrot.lane.b32.xlu1 %v149_v37, %s2030_s7 }
 0x275   :  { %v154_v39 = vpop.permute.xlu1 %153 }
 0x276   :  { %1717 = vmatmul.msk.f32.vlgmr.msra.gmra.mxu1 %vm88_vm4, %v154_v39  ;;  %v216_v40 = vsel %vm88_vm4, %v154_v39, 0.0  ;;  %v2199_v39 = vld [vmem:[#allocation5 + $0x78] sm:$0xff] }
 0x277   :  { %1719 = vmatmul.msk.f32.vlgmr.msra.gmra.mxu2 %vm217_vm5, %v216_v40  ;;  %v2201_v40 = vld [vmem:[#allocation5 + $0x70] sm:$0xff]  ;;  %424 = vmatpush.msrb.mxu1 %v2199_v39 }
 0x278   :  { %890 = vmatpush.msra.mxu2 %v2086_v1 }
 0x279   :  { %425 = vmatpush.msrb.mxu1 %v2201_v40 }
 0x27a   :  { %891 = vmatpush.msra.mxu2 %v2091_v2 }
 0x27c   :  { %892 = vmatpush.msra.mxu2 %v2098_v3 }
 0x27e   :  { %893 = vmatpush.msra.mxu2 %v2106_v4 }
 0x2f3   :  { %v174_v42 = vpop.f32.mrf.mxu1 }
 0x2f4   :  { %v177_v43 = vadd.f32 %v174_v42, %v151_v41  ;;  %v2204_v41 = vld [vmem:[#allocation5 + $0x68] sm:$0xff]  ;;  %v2207_v42 = vld [vmem:[#allocation5 + $0x60] sm:$0xff] }
 0x2f5   :  { %426 = vmatpush.msrb.mxu1 %v2204_v41 }
 0x2f6   :  { %1783 = vtanh.f32 %v177_v43  ;;  %v1718_v49 = vmul.f32 -1.442695, %v177_v43  ;;  %v2210_v43 = vld [vmem:[#allocation5 + $0x58] sm:$0xff] }
 0x2f7   :  { %427 = vmatpush.msrb.mxu1 %v2207_v42 }
 0x2f9   :  { %428 = vmatpush.msrb.mxu1 %v2210_v43 }
 0x2fa   :  { %v238_v45 = vpop.f32.mrf.mxu2 }
 0x2fb   :  { %v239_v46 = vadd.f32 %v2180_v44, %v238_v45  ;;  %v2213_v45 = vld [vmem:[#allocation5 + $0x50] sm:$0xff] }
 0x2fc   :  { %v1784_v47 = vpop.eup %1783  ;;  %429 = vmatpush.msrb.mxu1 %v2213_v45 }
 0x2fd   :  { %1785 = vtanh.f32 %v239_v46  ;;  %200 = vrot.lane.b32.xlu2 %v1784_v47, %s2036_s1  ;;  %v1720_v50 = vmul.f32 -1.442695, %v239_v46  ;;  %v2216_v46 = vld [vmem:[#allocation5 + $0x48] sm:$0xff] }
 0x2fe   :  { %1787 = vpow2.f32 %v1718_v49  ;;  %430 = vmatpush.msrb.mxu1 %v2216_v46 }
 0x2ff   :  { %1789 = vpow2.f32 %v1720_v50 }
 0x303   :  { %v1786_v48 = vpop.eup %1785 }
 0x304   :  { %v1788_v51 = vpop.eup %1787 }
 0x305   :  { %263 = vrot.lane.b32.xlu2 %v1786_v48, %s2036_s1  ;;  %v181_v52 = vadd.f32 1.0, %v1788_v51  ;;  %v1790_v53 = vpop.eup %1789  ;;  %v2221_v48 = vld [vmem:[#allocation5 + $0x40] sm:$0xff] }
 0x306   :  { %v244_v54 = vadd.f32 1.0, %v1790_v53  ;;  %431 = vmatpush.msrb.mxu1 %v2221_v48  ;;  %v279_v53 = vld [vmem:[#allocation3 + $0x4] sm:$0x3] }
 0x307   :  { %1791 = vrcp.f32 %v181_v52  ;;  %v193_v63 = vand.u32 2147483648, %v181_v52  ;;  %vm187_vm7 = vweird.f32 %v181_v52  ;;  %v191_v0 = vand.u32 2147483647, %v181_v52 }
 0x308   :  { %1793 = vrcp.f32 %v244_v54  ;;  %v256_v12 = vand.u32 2147483648, %v244_v54  ;;  %vm250_vm11 = vweird.f32 %v244_v54  ;;  %v254_v13 = vand.u32 2147483647, %v244_v54  ;;  %754 = vmatpush.msra.mxu1 %v2125_v29 }
 0x309   :  { %v194_v7 = vor.u32 1.1754944e-38, %v193_v63  ;;  %vm192_vm9 = vcmp.eq.f32.partialorder %v191_v0, 8.507059e+37 }
 0x30a   :  { %v257_v15 = vor.u32 1.1754944e-38, %v256_v12  ;;  %vm255_vm13 = vcmp.eq.f32.partialorder %v254_v13, 8.507059e+37  ;;  %755 = vmatpush.msra.mxu1 %v2127_v30 }
 0x30c   :  { %756 = vmatpush.msra.mxu1 %v2131_v31 }
 0x30d   :  { %v1792_v55 = vpop.eup %1791 }
 0x30e   :  { %v183_v56 = vmul.f32 %v1792_v55, %v181_v52  ;;  %v1794_v58 = vpop.eup %1793  ;;  %vm188_vm6 = vweird.f32 %v1792_v55  ;;  %757 = vmatpush.msra.mxu1 %v2135_v32 }
 0x30f   :  { %v246_v60 = vmul.f32 %v1794_v58, %v244_v54  ;;  %vm189_vm8 = vmor %vm187_vm7, %vm188_vm6  ;;  %vm251_vm10 = vweird.f32 %v1794_v58 }
 0x310   :  { %v184_v57 = vsub.f32 1.0, %v183_v56  ;;  %vm252_vm12 = vmor %vm250_vm11, %vm251_vm10  ;;  %758 = vmatpush.msra.mxu1 %v2139_v33 }
 0x311   :  { %v247_v62 = vsub.f32 1.0, %v246_v60  ;;  %v2266_v60 = vld [vmem:[%s2574_s3 + $0x1] ss:$0 sm:$0xff] }
 0x312   :  { %v185_v59 = vmul.f32 %v1792_v55, %v184_v57  ;;  %759 = vmatpush.msra.mxu1 %v2143_v34 }
 0x313   :  { %v248_v6 = vmul.f32 %v1794_v58, %v247_v62 }
 0x314   :  { %v186_v61 = vadd.f32 %v1792_v55, %v185_v59  ;;  %760 = vmatpush.msra.mxu1 %v2147_v35 }
 0x315   :  { %v249_v11 = vadd.f32 %v1794_v58, %v248_v6 }
 0x316   :  { %v190_v5 = vsel %vm189_vm8, %v1792_v55, %v186_v61  ;;  %761 = vmatpush.msra.mxu1 %v2154_v38 }
 0x317   :  { %v195_v9 = vsel %vm192_vm9, %v194_v7, %v190_v5  ;;  %v253_v14 = vsel %vm252_vm12, %v1794_v58, %v249_v11 }
 0x318   :  { %v258_v17 = vsel %vm255_vm13, %v257_v15, %v253_v14  ;;  %v198_v19 = vmul.f32 %v195_v9, %v2121_v27 }
 0x319   :  { %v261_v22 = vmul.f32 0.0, %v258_v17 }
 0x357   :  { %v201_v8 = vpop.permute.xlu2 %200 }
 0x358   :  { %v203_v10 = vmul.f32 %v201_v8, %v195_v9 }
 0x35a   :  { %205 = vrot.lane.b32.xlu0 %v203_v10, %s2030_s7 }
 0x35f   :  { %v264_v16 = vpop.permute.xlu2 %263 }
 0x360   :  { %v266_v18 = vmul.f32 %v264_v16, %v258_v17 }
 0x362   :  { %268 = vrot.lane.b32.xlu1 %v266_v18, %s2030_s7 }
 0x3cc   :  { %v206_v20 = vpop.permute.xlu0 %205 }
 0x3cd   :  { %v2188_v21 = vadd.f32 %v206_v20, %v198_v19 }
 0x3cf   :  { %1795 = vtanh.f32 %v2188_v21 }
 0x3d4   :  { %v269_v23 = vpop.permute.xlu1 %268 }
 0x3d5   :  { %v1796_v24 = vpop.eup %1795  ;;  %v2191_v25 = vadd.f32 %v269_v23, %v261_v22 }
 0x3d6   :  { %211 = vrot.lane.b32.xlu2 %v1796_v24, %s2036_s1 }
 0x3d7   :  { %1797 = vtanh.f32 %v2191_v25 }
 0x3dd   :  { %v1798_v26 = vpop.eup %1797 }
 0x3de   :  { %274 = vrot.lane.b32.xlu0 %v1798_v26, %s2036_s1 }
 0x430   :  { %v212_v28 = vpop.permute.xlu2 %211 }
 0x431   :  { %v214_v36 = vmul.f32 %v212_v28, %v195_v9 }
 0x433   :  { %281 = vrot.lane.b32.xlu1 %v214_v36, %s2030_s7 }
 0x450   :  { %v275_v27 = vpop.permute.xlu0 %274 }
 0x451   :  { %v277_v37 = vmul.f32 %v275_v27, %v258_v17 }
 0x453   :  { %409 = vrot.lane.b32.xlu0 %v277_v37, %s2030_s7  ;;  %345 = vrot.lane.b32.xlu2 %v277_v37, %s2036_s1 }
 0x4a5   :  { %v282_v47 = vpop.permute.xlu1 %281 }
 0x4a6   :  { %1721 = vmatmul.msk.f32.vlgmr.msra.gmra.mxu3 %vm88_vm4, %v282_v47 }
 0x4a7   :  { %623 = vmatpush.msra.mxu3 %v2199_v39 }
 0x4a9   :  { %624 = vmatpush.msra.mxu3 %v2201_v40 }
 0x4ab   :  { %625 = vmatpush.msra.mxu3 %v2204_v41 }
 0x4ad   :  { %v346_v49 = vpop.permute.xlu2 %345  ;;  %626 = vmatpush.msra.mxu3 %v2207_v42 }
 0x4ae   :  { %v348_v50 = vsel %vm88_vm4, %v282_v47, %v346_v49 }
 0x4af   :  { %1723 = vmatmul.msk.f32.vlgmr.msrb.gmra.mxu0 %vm217_vm5, %v348_v50  ;;  %627 = vmatpush.msra.mxu3 %v2210_v43 }
 0x4b0   :  { %822 = vmatpush.msrb.mxu0 %v2199_v39 }
 0x4b1   :  { %628 = vmatpush.msra.mxu3 %v2213_v45 }
 0x4b2   :  { %823 = vmatpush.msrb.mxu0 %v2201_v40 }
 0x4b3   :  { %629 = vmatpush.msra.mxu3 %v2216_v46 }
 0x4b4   :  { %824 = vmatpush.msrb.mxu0 %v2204_v41 }
 0x4b5   :  { %630 = vmatpush.msra.mxu3 %v2221_v48 }
 0x4b6   :  { %825 = vmatpush.msrb.mxu0 %v2207_v42 }
 0x4b8   :  { %826 = vmatpush.msrb.mxu0 %v2210_v43 }
 0x4ba   :  { %827 = vmatpush.msrb.mxu0 %v2213_v45 }
 0x4bc   :  { %828 = vmatpush.msrb.mxu0 %v2216_v46 }
 0x4be   :  { %829 = vmatpush.msrb.mxu0 %v2221_v48 }
 0x4c5   :  { %v410_v51 = vpop.permute.xlu0 %409 }
 0x4c6   :  { %v412_v52 = vsel %vm88_vm4, %v410_v51, 0.0 }
 0x4c7   :  { %1725 = vmatmul.msk.f32.vlgmr.msrb.gmra.mxu1 %vm217_vm5, %v412_v52 }
 0x4c8   :  { %1021 = vmatpush.msrb.mxu1 %v2199_v39 }
 0x4ca   :  { %1022 = vmatpush.msrb.mxu1 %v2201_v40 }
 0x4cc   :  { %1023 = vmatpush.msrb.mxu1 %v2204_v41 }
 0x4ce   :  { %1024 = vmatpush.msrb.mxu1 %v2207_v42 }
 0x4d0   :  { %1025 = vmatpush.msrb.mxu1 %v2210_v43 }
 0x4d2   :  { %1026 = vmatpush.msrb.mxu1 %v2213_v45 }
 0x4d4   :  { %1027 = vmatpush.msrb.mxu1 %v2216_v46 }
 0x4d6   :  { %1028 = vmatpush.msrb.mxu1 %v2221_v48 }
 0x529   :  { %v302_v54 = vpop.f32.mrf.mxu3 }
 0x52a   :  { %v305_v55 = vadd.f32 %v302_v54, %v279_v53 }
 0x52c   :  { %1799 = vtanh.f32 %v305_v55  ;;  %v369_v56 = vpop.f32.mrf.mxu0  ;;  %v1722_v7 = vmul.f32 -1.442695, %v305_v55 }
 0x52d   :  { %v370_v57 = vadd.f32 %v2180_v44, %v369_v56 }
 0x52f   :  { %1801 = vtanh.f32 %v370_v57  ;;  %v1724_v0 = vmul.f32 -1.442695, %v370_v57 }
 0x532   :  { %v1800_v58 = vpop.eup %1799 }
 0x533   :  { %328 = vrot.lane.b32.xlu1 %v1800_v58, %s2036_s1 }
 0x535   :  { %v1802_v59 = vpop.eup %1801 }
 0x536   :  { %394 = vrot.lane.b32.xlu2 %v1802_v59, %s2036_s1 }
 0x544   :  { %v433_v61 = vpop.f32.mrf.mxu1 }
 0x545   :  { %v434_v62 = vadd.f32 %v2266_v60, %v433_v61 }
 0x547   :  { %1803 = vtanh.f32 %v434_v62  ;;  %v1726_v26 = vmul.f32 -1.442695, %v434_v62 }
 0x548   :  { %1805 = vpow2.f32 %v1724_v0 }
 0x54d   :  { %v1804_v63 = vpop.eup %1803 }
 0x54e   :  { %458 = vrot.lane.b32.xlu0 %v1804_v63, %s2036_s1  ;;  %v1806_v5 = vpop.eup %1805 }
 0x54f   :  { %v375_v6 = vadd.f32 1.0, %v1806_v5 }
 0x551   :  { %1807 = vrcp.f32 %v375_v6  ;;  %v387_v15 = vand.u32 2147483648, %v375_v6  ;;  %vm381_vm15 = vweird.f32 %v375_v6  ;;  %v385_v16 = vand.u32 2147483647, %v375_v6 }
 0x552   :  { %1809 = vpow2.f32 %v1722_v7 }
 0x553   :  { %v388_v18 = vor.u32 1.1754944e-38, %v387_v15  ;;  %vm386_vm1 = vcmp.eq.f32.partialorder %v385_v16, 8.507059e+37 }
 0x557   :  { %v1808_v8 = vpop.eup %1807 }
 0x558   :  { %v377_v9 = vmul.f32 %v1808_v8, %v375_v6  ;;  %v1810_v11 = vpop.eup %1809  ;;  %vm382_vm14 = vweird.f32 %v1808_v8 }
 0x559   :  { %v309_v12 = vadd.f32 1.0, %v1810_v11  ;;  %vm383_vm0 = vmor %vm381_vm15, %vm382_vm14 }
 0x55a   :  { %v378_v10 = vsub.f32 1.0, %v377_v9 }
 0x55b   :  { %1811 = vrcp.f32 %v309_v12  ;;  %v321_v47 = vand.u32 2147483648, %v309_v12  ;;  %vm315_vm3 = vweird.f32 %v309_v12  ;;  %v319_v50 = vand.u32 2147483647, %v309_v12 }
 0x55c   :  { %v379_v13 = vmul.f32 %v1808_v8, %v378_v10  ;;  %1813 = vpow2.f32 %v1726_v26 }
 0x55d   :  { %v322_v52 = vor.u32 1.1754944e-38, %v321_v47  ;;  %vm320_vm7 = vcmp.eq.f32.partialorder %v319_v50, 8.507059e+37  ;;  %v474_v50 = vld [vmem:[#allocation3 + $0x6] sm:$0x3] }
 0x55e   :  { %v380_v14 = vadd.f32 %v1808_v8, %v379_v13 }
 0x560   :  { %v384_v17 = vsel %vm383_vm0, %v1808_v8, %v380_v14 }
 0x561   :  { %v1812_v19 = vpop.eup %1811  ;;  %v389_v22 = vsel %vm386_vm1, %v388_v18, %v384_v17 }
 0x562   :  { %v311_v24 = vmul.f32 %v1812_v19, %v309_v12  ;;  %v1814_v27 = vpop.eup %1813  ;;  %vm316_vm2 = vweird.f32 %v1812_v19  ;;  %v392_v9 = vmul.f32 %v389_v22, %v2191_v25 }
 0x563   :  { %v439_v49 = vadd.f32 1.0, %v1814_v27  ;;  %vm317_vm6 = vmor %vm315_vm3, %vm316_vm2 }
 0x564   :  { %v312_v28 = vsub.f32 1.0, %v311_v24 }
 0x565   :  { %1815 = vrcp.f32 %v439_v49  ;;  %v451_v62 = vand.u32 2147483648, %v439_v49  ;;  %vm445_vm9 = vweird.f32 %v439_v49  ;;  %v449_v63 = vand.u32 2147483647, %v439_v49 }
 0x566   :  { %v313_v36 = vmul.f32 %v1812_v19, %v312_v28 }
 0x567   :  { %v452_v5 = vor.u32 1.1754944e-38, %v451_v62  ;;  %vm450_vm11 = vcmp.eq.f32.partialorder %v449_v63, 8.507059e+37 }
 0x568   :  { %v314_v37 = vadd.f32 %v1812_v19, %v313_v36 }
 0x56a   :  { %v318_v51 = vsel %vm317_vm6, %v1812_v19, %v314_v37 }
 0x56b   :  { %v323_v54 = vsel %vm320_vm7, %v322_v52, %v318_v51  ;;  %v1816_v56 = vpop.eup %1815 }
 0x56c   :  { %v441_v57 = vmul.f32 %v1816_v56, %v439_v49  ;;  %vm446_vm8 = vweird.f32 %v1816_v56  ;;  %v326_v13 = vmul.f32 %v323_v54, %v2188_v21 }
 0x56d   :  { %vm447_vm10 = vmor %vm445_vm9, %vm446_vm8 }
 0x56e   :  { %v442_v58 = vsub.f32 1.0, %v441_v57 }
 0x570   :  { %v443_v59 = vmul.f32 %v1816_v56, %v442_v58 }
 0x572   :  { %v444_v61 = vadd.f32 %v1816_v56, %v443_v59 }
 0x574   :  { %v448_v0 = vsel %vm447_vm10, %v1816_v56, %v444_v61 }
 0x575   :  { %v453_v7 = vsel %vm450_vm11, %v452_v5, %v448_v0 }
 0x576   :  { %v456_v17 = vmul.f32 0.0, %v453_v7 }
 0x590   :  { %v395_v20 = vpop.permute.xlu2 %394 }
 0x591   :  { %v397_v23 = vmul.f32 %v395_v20, %v389_v22 }
 0x593   :  { %399 = vrot.lane.b32.xlu2 %v397_v23, %s2030_s7 }
 0x5a5   :  { %v329_v53 = vpop.permute.xlu1 %328 }
 0x5a6   :  { %v331_v55 = vmul.f32 %v329_v53, %v323_v54 }
 0x5a8   :  { %333 = vrot.lane.b32.xlu1 %v331_v55, %s2030_s7 }
 0x5c0   :  { %v459_v6 = vpop.permute.xlu0 %458 }
 0x5c1   :  { %v461_v8 = vmul.f32 %v459_v6, %v453_v7 }
 0x5c3   :  { %463 = vrot.lane.b32.xlu0 %v461_v8, %s2030_s7 }
 0x5ed   :  { %v400_v10 = vpop.permute.xlu2 %399 }
 0x5ee   :  { %v2274_v11 = vadd.f32 %v400_v10, %v392_v9 }
 0x5f0   :  { %1817 = vtanh.f32 %v2274_v11 }
 0x5f6   :  { %v1818_v12 = vpop.eup %1817 }
 0x5f7   :  { %405 = vrot.lane.b32.xlu2 %v1818_v12, %s2036_s1 }
 0x61a   :  { %v334_v14 = vpop.permute.xlu1 %333 }
 0x61b   :  { %v2279_v15 = vadd.f32 %v334_v14, %v326_v13 }
 0x61d   :  { %1819 = vtanh.f32 %v2279_v15 }
 0x623   :  { %v1820_v16 = vpop.eup %1819 }
 0x624   :  { %339 = vrot.lane.b32.xlu1 %v1820_v16, %s2036_s1 }
 0x635   :  { %v464_v25 = vpop.permute.xlu0 %463 }
 0x636   :  { %v2283_v18 = vadd.f32 %v464_v25, %v456_v17 }
 0x638   :  { %1821 = vtanh.f32 %v2283_v18 }
 0x63e   :  { %v1822_v19 = vpop.eup %1821 }
 0x63f   :  { %469 = vrot.lane.b32.xlu0 %v1822_v19, %s2036_s1 }
 0x651   :  { %v406_v20 = vpop.permute.xlu2 %405 }
 0x652   :  { %v408_v23 = vmul.f32 %v406_v20, %v389_v22 }
 0x654   :  { %604 = vrot.lane.b32.xlu0 %v408_v23, %s2030_s7  ;;  %540 = vrot.lane.b32.xlu2 %v408_v23, %s2036_s1 }
 0x696   :  { %v340_v21 = vpop.permute.xlu1 %339 }
 0x697   :  { %v342_v24 = vmul.f32 %v340_v21, %v323_v54 }
 0x699   :  { %476 = vrot.lane.b32.xlu1 %v342_v24, %s2030_s7 }
 0x6ae   :  { %v541_v36 = vpop.permute.xlu2 %540 }
 0x6b1   :  { %v470_v26 = vpop.permute.xlu0 %469 }
 0x6b2   :  { %v472_v28 = vmul.f32 %v470_v26, %v453_v7 }
 0x6b4   :  { %608 = vrot.lane.b32.xlu1 %v472_v28, %s2036_s1 }
 0x6c6   :  { %v605_v22 = vpop.permute.xlu0 %604 }
 0x70b   :  { %v477_v27 = vpop.permute.xlu1 %476 }
 0x70c   :  { %v543_v37 = vsel %vm88_vm4, %v477_v27, %v541_v36  ;;  %1727 = vmatmul.msk.f32.vlgmr.msrb.gmra.mxu3 %vm88_vm4, %v477_v27 }
 0x70d   :  { %1729 = vmatmul.msk.f32.vlgmr.msrb.gmra.mxu2 %vm217_vm5, %v543_v37  ;;  %953 = vmatpush.msrb.mxu3 %v2125_v29 }
 0x70e   :  { %1089 = vmatpush.msrb.mxu2 %v2086_v1 }
 0x70f   :  { %954 = vmatpush.msrb.mxu3 %v2127_v30 }
 0x710   :  { %1090 = vmatpush.msrb.mxu2 %v2091_v2 }
 0x711   :  { %955 = vmatpush.msrb.mxu3 %v2131_v31 }
 0x712   :  { %1091 = vmatpush.msrb.mxu2 %v2098_v3 }
 0x713   :  { %956 = vmatpush.msrb.mxu3 %v2135_v32 }
 0x714   :  { %1092 = vmatpush.msrb.mxu2 %v2106_v4 }
 0x715   :  { %957 = vmatpush.msrb.mxu3 %v2139_v33 }
 0x717   :  { %958 = vmatpush.msrb.mxu3 %v2143_v34 }
 0x719   :  { %959 = vmatpush.msrb.mxu3 %v2147_v35 }
 0x71b   :  { %960 = vmatpush.msrb.mxu3 %v2154_v38 }
 0x726   :  { %v609_v47 = vpop.permute.xlu1 %608 }
 0x727   :  { %v611_v49 = vsel %vm88_vm4, %v605_v22, %v609_v47 }
 0x728   :  { %1731 = vmatmul.msk.f32.vlgmr.msra.gmra.mxu3 %vm217_vm5, %v611_v49 }
 0x729   :  { %1288 = vmatpush.msra.mxu3 %v2086_v1 }
 0x72b   :  { %1289 = vmatpush.msra.mxu3 %v2091_v2 }
 0x72d   :  { %1290 = vmatpush.msra.mxu3 %v2098_v3 }
 0x72f   :  { %1291 = vmatpush.msra.mxu3 %v2106_v4 }
 0x78f   :  { %v497_v51 = vpop.f32.mrf.mxu3 }
 0x790   :  { %v500_v52 = vadd.f32 %v497_v51, %v474_v50  ;;  %v564_v53 = vpop.f32.mrf.mxu2 }
 0x791   :  { %v565_v54 = vadd.f32 %v2180_v44, %v564_v53 }
 0x792   :  { %1823 = vtanh.f32 %v500_v52  ;;  %v1728_v4 = vmul.f32 -1.442695, %v500_v52 }
 0x793   :  { %1825 = vtanh.f32 %v565_v54  ;;  %v1730_v61 = vmul.f32 -1.442695, %v565_v54 }
 0x798   :  { %v1824_v55 = vpop.eup %1823 }
 0x799   :  { %v1826_v56 = vpop.eup %1825  ;;  %523 = vrot.lane.b32.xlu2 %v1824_v55, %s2036_s1 }
 0x79a   :  { %589 = vrot.lane.b32.xlu0 %v1826_v56, %s2036_s1 }
 0x7ab   :  { %v632_v1 = vpop.f32.mrf.mxu3 }
 0x7ac   :  { %v633_v2 = vadd.f32 %v2266_v60, %v632_v1 }
 0x7ae   :  { %1827 = vtanh.f32 %v633_v2  ;;  %v1732_v19 = vmul.f32 -1.442695, %v633_v2 }
 0x7af   :  { %1829 = vpow2.f32 %v1728_v4 }
 0x7b4   :  { %v1828_v3 = vpop.eup %1827 }
 0x7b5   :  { %657 = vrot.lane.b32.xlu1 %v1828_v3, %s2036_s1  ;;  %v1830_v57 = vpop.eup %1829 }
 0x7b6   :  { %v504_v58 = vadd.f32 1.0, %v1830_v57 }
 0x7b8   :  { %1831 = vrcp.f32 %v504_v58  ;;  %v516_v8 = vand.u32 2147483648, %v504_v58  ;;  %vm510_vm13 = vweird.f32 %v504_v58  ;;  %v514_v9 = vand.u32 2147483647, %v504_v58 }
 0x7b9   :  { %1833 = vpow2.f32 %v1730_v61 }
 0x7ba   :  { %v517_v12 = vor.u32 1.1754944e-38, %v516_v8  ;;  %vm515_vm15 = vcmp.eq.f32.partialorder %v514_v9, 8.507059e+37 }
 0x7be   :  { %v1832_v59 = vpop.eup %1831 }
 0x7bf   :  { %v506_v62 = vmul.f32 %v1832_v59, %v504_v58  ;;  %v1834_v5 = vpop.eup %1833  ;;  %vm511_vm12 = vweird.f32 %v1832_v59 }
 0x7c0   :  { %v570_v6 = vadd.f32 1.0, %v1834_v5  ;;  %vm512_vm14 = vmor %vm510_vm13, %vm511_vm12 }
 0x7c1   :  { %v507_v63 = vsub.f32 1.0, %v506_v62 }
 0x7c2   :  { %1835 = vrcp.f32 %v570_v6  ;;  %v582_v26 = vand.u32 2147483648, %v570_v6  ;;  %vm576_vm1 = vweird.f32 %v570_v6  ;;  %v580_v36 = vand.u32 2147483647, %v570_v6 }
 0x7c3   :  { %v508_v0 = vmul.f32 %v1832_v59, %v507_v63  ;;  %1837 = vpow2.f32 %v1732_v19 }
 0x7c4   :  { %v583_v37 = vor.u32 1.1754944e-38, %v582_v26  ;;  %vm581_vm3 = vcmp.eq.f32.partialorder %v580_v36, 8.507059e+37 }
 0x7c5   :  { %v509_v7 = vadd.f32 %v1832_v59, %v508_v0 }
 0x7c7   :  { %v513_v10 = vsel %vm512_vm14, %v1832_v59, %v509_v7 }
 0x7c8   :  { %v518_v13 = vsel %vm515_vm15, %v517_v12, %v513_v10  ;;  %v1836_v17 = vpop.eup %1835 }
 0x7c9   :  { %v572_v25 = vmul.f32 %v1836_v17, %v570_v6  ;;  %v1838_v21 = vpop.eup %1837  ;;  %vm577_vm0 = vweird.f32 %v1836_v17  ;;  %v521_v58 = vmul.f32 %v518_v13, %v2279_v15 }
 0x7ca   :  { %v638_v28 = vadd.f32 1.0, %v1838_v21  ;;  %vm578_vm2 = vmor %vm576_vm1, %vm577_vm0 }
 0x7cb   :  { %v573_v20 = vsub.f32 1.0, %v572_v25 }
 0x7cc   :  { %1839 = vrcp.f32 %v638_v28  ;;  %v650_v55 = vand.u32 2147483648, %v638_v28  ;;  %vm644_vm7 = vweird.f32 %v638_v28  ;;  %v648_v56 = vand.u32 2147483647, %v638_v28 }
 0x7cd   :  { %v574_v23 = vmul.f32 %v1836_v17, %v573_v20 }
 0x7ce   :  { %v651_v2 = vor.u32 1.1754944e-38, %v650_v55  ;;  %vm649_vm9 = vcmp.eq.f32.partialorder %v648_v56, 8.507059e+37 }
 0x7cf   :  { %v575_v24 = vadd.f32 %v1836_v17, %v574_v23 }
 0x7d1   :  { %v579_v27 = vsel %vm578_vm2, %v1836_v17, %v575_v24 }
 0x7d2   :  { %v584_v47 = vsel %vm581_vm3, %v583_v37, %v579_v27  ;;  %v1840_v50 = vpop.eup %1839 }
 0x7d3   :  { %v640_v51 = vmul.f32 %v1840_v50, %v638_v28  ;;  %vm645_vm6 = vweird.f32 %v1840_v50  ;;  %v587_v63 = vmul.f32 %v584_v47, %v2274_v11 }
 0x7d4   :  { %vm646_vm8 = vmor %vm644_vm7, %vm645_vm6 }
 0x7d5   :  { %v641_v52 = vsub.f32 1.0, %v640_v51 }
 0x7d7   :  { %v642_v53 = vmul.f32 %v1840_v50, %v641_v52 }
 0x7d9   :  { %v643_v54 = vadd.f32 %v1840_v50, %v642_v53 }
 0x7db   :  { %v647_v1 = vsel %vm646_vm8, %v1840_v50, %v643_v54 }
 0x7dc   :  { %v652_v4 = vsel %vm649_vm9, %v651_v2, %v647_v1 }
 0x7dd   :  { %v655_v15 = vmul.f32 %v652_v4, %v2283_v18 }
 0x7f3   :  { %v524_v14 = vpop.permute.xlu2 %523 }
 0x7f4   :  { %v526_v16 = vmul.f32 %v524_v14, %v518_v13 }
 0x7f6   :  { %528 = vrot.lane.b32.xlu2 %v526_v16, %s2030_s7 }
 0x80c   :  { %v590_v22 = vpop.permute.xlu0 %589 }
 0x80d   :  { %v592_v49 = vmul.f32 %v590_v22, %v584_v47 }
 0x80f   :  { %594 = vrot.lane.b32.xlu0 %v592_v49, %s2030_s7 }
 0x827   :  { %v658_v3 = vpop.permute.xlu1 %657 }
 0x828   :  { %v660_v57 = vmul.f32 %v658_v3, %v652_v4 }
 0x82a   :  { %662 = vrot.lane.b32.xlu1 %v660_v57, %s2030_s7 }
 0x850   :  { %v529_v59 = vpop.permute.xlu2 %528 }
 0x851   :  { %v2321_v61 = vadd.f32 %v529_v59, %v521_v58 }
 0x853   :  { %1841 = vtanh.f32 %v2321_v61 }
 0x859   :  { %v1842_v62 = vpop.eup %1841 }
 0x85a   :  { %534 = vrot.lane.b32.xlu2 %v1842_v62, %s2036_s1 }
 0x881   :  { %v595_v0 = vpop.permute.xlu0 %594 }
 0x882   :  { %v2326_v5 = vadd.f32 %v595_v0, %v587_v63 }
 0x884   :  { %1843 = vtanh.f32 %v2326_v5 }
 0x88a   :  { %v1844_v6 = vpop.eup %1843 }
 0x88b   :  { %600 = vrot.lane.b32.xlu0 %v1844_v6, %s2036_s1 }
 0x89c   :  { %v663_v7 = vpop.permute.xlu1 %662 }
 0x89d   :  { %v2331_v8 = vadd.f32 %v663_v7, %v655_v15 }
 0x89f   :  { %1845 = vtanh.f32 %v2331_v8 }
 0x8a5   :  { %v1846_v9 = vpop.eup %1845 }
 0x8a6   :  { %668 = vrot.lane.b32.xlu1 %v1846_v9, %s2036_s1 }
 0x8b4   :  { %v535_v10 = vpop.permute.xlu2 %534 }
 0x8b5   :  { %v537_v11 = vmul.f32 %v535_v10, %v518_v13 }
 0x8b7   :  { %675 = vrot.lane.b32.xlu2 %v537_v11, %s2030_s7 }
 0x8fd   :  { %v601_v12 = vpop.permute.xlu0 %600 }
 0x8fe   :  { %v603_v14 = vmul.f32 %v601_v12, %v584_v47 }
 0x900   :  { %803 = vrot.lane.b32.xlu1 %v603_v14, %s2030_s7  ;;  %739 = vrot.lane.b32.xlu0 %v603_v14, %s2036_s1 }
 0x911   :  { %v676_v16 = vpop.permute.xlu2 %675 }
 0x912   :  { %1733 = vmatmul.msk.f32.vlgmr.msra.gmra.mxu0 %vm88_vm4, %v676_v16 }
 0x913   :  { %1152 = vmatpush.msra.mxu0 %v2125_v29 }
 0x915   :  { %1153 = vmatpush.msra.mxu0 %v2127_v30 }
 0x917   :  { %1154 = vmatpush.msra.mxu0 %v2131_v31 }
 0x918   :  { %v669_v18 = vpop.permute.xlu1 %668 }
 0x919   :  { %v671_v17 = vmul.f32 %v669_v18, %v652_v4  ;;  %1155 = vmatpush.msra.mxu0 %v2135_v32 }
 0x91b   :  { %807 = vrot.lane.b32.xlu2 %v671_v17, %s2036_s1  ;;  %1156 = vmatpush.msra.mxu0 %v2139_v33 }
 0x91d   :  { %1157 = vmatpush.msra.mxu0 %v2143_v34 }
 0x91f   :  { %1158 = vmatpush.msra.mxu0 %v2147_v35 }
 0x921   :  { %1159 = vmatpush.msra.mxu0 %v2154_v38 }
 0x972   :  { %v740_v13 = vpop.permute.xlu0 %739  ;;  %v804_v19 = vpop.permute.xlu1 %803 }
 0x973   :  { %v742_v25 = vsel %vm88_vm4, %v676_v16, %v740_v13 }
 0x974   :  { %1735 = vmatmul.msk.f32.vlgmr.msra.gmra.mxu1 %vm217_vm5, %v742_v25 }
 0x975   :  { %v808_v20 = vpop.permute.xlu2 %807  ;;  %1351 = vmatpush.msra.mxu1 %v2125_v29 }
 0x976   :  { %v810_v23 = vsel %vm88_vm4, %v804_v19, %v808_v20 }
 0x977   :  { %1737 = vmatmul.msk.f32.vlgmr.msrb.gmra.mxu0 %vm217_vm5, %v810_v23  ;;  %1352 = vmatpush.msra.mxu1 %v2127_v30 }
 0x978   :  { %1488 = vmatpush.msrb.mxu0 %v2125_v29  ;;  %v673_v29 = vld [vmem:[#allocation3 + $0x8] sm:$0x3] }
 0x979   :  { %1353 = vmatpush.msra.mxu1 %v2131_v31 }
 0x97a   :  { %1489 = vmatpush.msrb.mxu0 %v2127_v30 }
 0x97b   :  { %1354 = vmatpush.msra.mxu1 %v2135_v32 }
 0x97c   :  { %1490 = vmatpush.msrb.mxu0 %v2131_v31 }
 0x97d   :  { %1355 = vmatpush.msra.mxu1 %v2139_v33 }
 0x97e   :  { %1491 = vmatpush.msrb.mxu0 %v2135_v32 }
 0x97f   :  { %1356 = vmatpush.msra.mxu1 %v2143_v34 }
 0x980   :  { %1492 = vmatpush.msrb.mxu0 %v2139_v33 }
 0x981   :  { %1357 = vmatpush.msra.mxu1 %v2147_v35 }
 0x982   :  { %1493 = vmatpush.msrb.mxu0 %v2143_v34 }
 0x983   :  { %1358 = vmatpush.msra.mxu1 %v2154_v38 }
 0x984   :  { %1494 = vmatpush.msrb.mxu0 %v2147_v35 }
 0x986   :  { %1495 = vmatpush.msrb.mxu0 %v2154_v38 }
 0x98f   :  { %v696_v30 = vpop.f32.mrf.mxu0 }
 0x990   :  { %v699_v31 = vadd.f32 %v696_v30, %v673_v29 }
 0x992   :  { %1847 = vtanh.f32 %v699_v31  ;;  %v1734_v32 = vmul.f32 -1.442695, %v699_v31 }
 0x994   :  { %1849 = vpow2.f32 %v1734_v32 }
 0x998   :  { %v1848_v21 = vpop.eup %1847 }
 0x999   :  { %722 = vrot.lane.b32.xlu0 %v1848_v21, %s2036_s1 }
 0x99a   :  { %v1850_v33 = vpop.eup %1849 }
 0x99b   :  { %v703_v24 = vadd.f32 1.0, %v1850_v33 }
 0x99d   :  { %1851 = vrcp.f32 %v703_v24  ;;  %v715_v50 = vand.u32 2147483648, %v703_v24  ;;  %vm709_vm11 = vweird.f32 %v703_v24 }
 0x99f   :  { %v716_v52 = vor.u32 1.1754944e-38, %v715_v50 }
 0x9a3   :  { %v1852_v35 = vpop.eup %1851 }
 0x9a4   :  { %v705_v36 = vmul.f32 %v1852_v35, %v703_v24  ;;  %vm710_vm10 = vweird.f32 %v1852_v35 }
 0x9a5   :  { %vm711_vm12 = vmor %vm709_vm11, %vm710_vm10 }
 0x9a6   :  { %v706_v37 = vsub.f32 1.0, %v705_v36 }
 0x9a8   :  { %v707_v47 = vmul.f32 %v1852_v35, %v706_v37 }
 0x9aa   :  { %v708_v49 = vadd.f32 %v1852_v35, %v707_v47 }
 0x9ac   :  { %v712_v51 = vsel %vm711_vm12, %v1852_v35, %v708_v49 }
 0x9f1   :  { %v763_v26 = vpop.f32.mrf.mxu1 }
 0x9f2   :  { %v764_v34 = vadd.f32 %v2180_v44, %v763_v26  ;;  %v713_v44 = vand.u32 2147483647, %v703_v24 }
 0x9f4   :  { %1853 = vtanh.f32 %v764_v34  ;;  %v831_v28 = vpop.f32.mrf.mxu0  ;;  %vm714_vm13 = vcmp.eq.f32.partialorder %v713_v44, 8.507059e+37  ;;  %v1736_v3 = vmul.f32 -1.442695, %v764_v34 }
 0x9f5   :  { %v832_v38 = vadd.f32 %v2266_v60, %v831_v28  ;;  %v2373_v54 = vsel %vm714_vm13, %v716_v52, %v712_v51 }
 0x9f6   :  { %v720_v21 = vmul.f32 %v2373_v54, %v2321_v61 }
 0x9f7   :  { %1855 = vtanh.f32 %v832_v38  ;;  %v1738_v56 = vmul.f32 -1.442695, %v832_v38 }
 0x9f9   :  { %1857 = vpow2.f32 %v1738_v56 }
 0x9fa   :  { %v1854_v27 = vpop.eup %1853 }
 0x9fb   :  { %788 = vrot.lane.b32.xlu1 %v1854_v27, %s2036_s1 }
 0x9fd   :  { %v1856_v22 = vpop.eup %1855 }
 0x9fe   :  { %856 = vrot.lane.b32.xlu2 %v1856_v22, %s2036_s1 }
 0x9ff   :  { %v1858_v1 = vpop.eup %1857 }
 0xa00   :  { %v837_v2 = vadd.f32 1.0, %v1858_v1 }
 0xa02   :  { %1859 = vrcp.f32 %v837_v2  ;;  %v849_v6 = vand.u32 2147483648, %v837_v2  ;;  %vm843_vm15 = vweird.f32 %v837_v2  ;;  %v847_v15 = vand.u32 2147483647, %v837_v2 }
 0xa03   :  { %1861 = vpow2.f32 %v1736_v3 }
 0xa04   :  { %v850_v9 = vor.u32 1.1754944e-38, %v849_v6  ;;  %vm848_vm1 = vcmp.eq.f32.partialorder %v847_v15, 8.507059e+37 }
 0xa08   :  { %v1860_v4 = vpop.eup %1859 }
 0xa09   :  { %v839_v57 = vmul.f32 %v1860_v4, %v837_v2  ;;  %v1862_v59 = vpop.eup %1861  ;;  %vm844_vm14 = vweird.f32 %v1860_v4 }
 0xa0a   :  { %v769_v62 = vadd.f32 1.0, %v1862_v59  ;;  %vm845_vm0 = vmor %vm843_vm15, %vm844_vm14 }
 0xa0b   :  { %v723_v53 = vpop.permute.xlu0 %722  ;;  %v840_v58 = vsub.f32 1.0, %v839_v57 }
 0xa0c   :  { %v725_v55 = vmul.f32 %v723_v53, %v2373_v54  ;;  %1863 = vrcp.f32 %v769_v62  ;;  %v781_v25 = vand.u32 2147483648, %v769_v62  ;;  %vm775_vm3 = vweird.f32 %v769_v62 }
 0xa0d   :  { %v841_v63 = vmul.f32 %v1860_v4, %v840_v58  ;;  %v779_v19 = vand.u32 2147483647, %v769_v62 }
 0xa0e   :  { %727 = vrot.lane.b32.xlu0 %v725_v55, %s2030_s7  ;;  %v782_v23 = vor.u32 1.1754944e-38, %v781_v25  ;;  %v872_v55 = vld [vmem:[#allocation3 + $0xa] sm:$0x3] }
 0xa0f   :  { %v842_v0 = vadd.f32 %v1860_v4, %v841_v63  ;;  %vm780_vm7 = vcmp.eq.f32.partialorder %v779_v19, 8.507059e+37 }
 0xa11   :  { %v846_v7 = vsel %vm845_vm0, %v1860_v4, %v842_v0 }
 0xa12   :  { %v1864_v10 = vpop.eup %1863  ;;  %v851_v12 = vsel %vm848_vm1, %v850_v9, %v846_v7 }
 0xa13   :  { %v771_v16 = vmul.f32 %v1864_v10, %v769_v62  ;;  %vm776_vm2 = vweird.f32 %v1864_v10  ;;  %v854_v26 = vmul.f32 %v851_v12, %v2331_v8 }
 0xa14   :  { %vm777_vm6 = vmor %vm775_vm3, %vm776_vm2 }
 0xa15   :  { %v772_v18 = vsub.f32 1.0, %v771_v16 }
 0xa17   :  { %v773_v17 = vmul.f32 %v1864_v10, %v772_v18 }
 0xa19   :  { %v774_v13 = vadd.f32 %v1864_v10, %v773_v17 }
 0xa1b   :  { %v778_v20 = vsel %vm777_vm6, %v1864_v10, %v774_v13 }
 0xa1c   :  { %v783_v30 = vsel %vm780_vm7, %v782_v23, %v778_v20 }
 0xa1d   :  { %v786_v61 = vmul.f32 %v783_v30, %v2326_v5 }
 0xa58   :  { %v857_v11 = vpop.permute.xlu2 %856 }
 0xa59   :  { %v859_v14 = vmul.f32 %v857_v11, %v851_v12 }
 0xa5b   :  { %861 = vrot.lane.b32.xlu2 %v859_v14, %s2030_s7 }
 0xa6d   :  { %v789_v29 = vpop.permute.xlu1 %788 }
 0xa6e   :  { %v791_v31 = vmul.f32 %v789_v29, %v783_v30 }
 0xa70   :  { %793 = vrot.lane.b32.xlu1 %v791_v31, %s2030_s7 }
 0xa80   :  { %v728_v32 = vpop.permute.xlu0 %727 }
 0xa81   :  { %v2381_v33 = vadd.f32 %v728_v32, %v720_v21 }
 0xa83   :  { %1865 = vtanh.f32 %v2381_v33 }
 0xa89   :  { %v1866_v24 = vpop.eup %1865 }
 0xa8a   :  { %733 = vrot.lane.b32.xlu0 %v1866_v24, %s2036_s1 }
 0xab5   :  { %v862_v34 = vpop.permute.xlu2 %861 }
 0xab6   :  { %v2386_v28 = vadd.f32 %v862_v34, %v854_v26 }
 0xab8   :  { %1867 = vtanh.f32 %v2386_v28 }
 0xabe   :  { %v1868_v35 = vpop.eup %1867 }
 0xabf   :  { %867 = vrot.lane.b32.xlu2 %v1868_v35, %s2036_s1 }
 0xae2   :  { %v794_v38 = vpop.permute.xlu1 %793 }
 0xae3   :  { %v2391_v36 = vadd.f32 %v794_v38, %v786_v61 }
 0xae5   :  { %1869 = vtanh.f32 %v2391_v36 }
 0xaeb   :  { %v1870_v27 = vpop.eup %1869 }
 0xaec   :  { %799 = vrot.lane.b32.xlu1 %v1870_v27, %s2036_s1 }
 0xafc   :  { %v734_v37 = vpop.permute.xlu0 %733 }
 0xafd   :  { %v736_v8 = vmul.f32 %v734_v37, %v2373_v54 }
 0xaff   :  { %874 = vrot.lane.b32.xlu0 %v736_v8, %s2030_s7 }
 0xb19   :  { %v868_v22 = vpop.permute.xlu2 %867 }
 0xb1a   :  { %v870_v47 = vmul.f32 %v868_v22, %v851_v12 }
 0xb1c   :  { %1006 = vrot.lane.b32.xlu0 %v870_v47, %s2036_s1 }
 0xb5e   :  { %v800_v49 = vpop.permute.xlu1 %799 }
 0xb5f   :  { %v802_v50 = vmul.f32 %v800_v49, %v783_v30 }
 0xb61   :  { %938 = vrot.lane.b32.xlu1 %v802_v50, %s2036_s1  ;;  %1002 = vrot.lane.b32.xlu2 %v802_v50, %s2030_s7 }
 0xb71   :  { %v875_v5 = vpop.permute.xlu0 %874 }
 0xb72   :  { %1739 = vmatmul.msk.f32.vlgmr.msra.gmra.mxu2 %vm88_vm4, %v875_v5 }
 0xb73   :  { %1220 = vmatpush.msra.mxu2 %v2199_v39 }
 0xb75   :  { %1221 = vmatpush.msra.mxu2 %v2201_v40 }
 0xb77   :  { %1222 = vmatpush.msra.mxu2 %v2204_v41 }
 0xb79   :  { %1223 = vmatpush.msra.mxu2 %v2207_v42 }
 0xb7b   :  { %1224 = vmatpush.msra.mxu2 %v2210_v43 }
 0xb7d   :  { %1225 = vmatpush.msra.mxu2 %v2213_v45 }
 0xb7f   :  { %1226 = vmatpush.msra.mxu2 %v2216_v46 }
 0xb81   :  { %1227 = vmatpush.msra.mxu2 %v2221_v48 }
 0xb8e   :  { %v1007_v44 = vpop.permute.xlu0 %1006 }
 0xbbb   :  { %v1003_v51 = vpop.permute.xlu2 %1002 }
 0xbbc   :  { %v1009_v52 = vsel %vm88_vm4, %v1003_v51, %v1007_v44 }
 0xbbd   :  { %1743 = vmatmul.msk.f32.vlgmr.msrb.gmra.mxu1 %vm217_vm5, %v1009_v52 }
 0xbbe   :  { %1625 = vmatpush.msrb.mxu1 %v2199_v39 }
 0xbc0   :  { %1626 = vmatpush.msrb.mxu1 %v2201_v40 }
 0xbc2   :  { %1627 = vmatpush.msrb.mxu1 %v2204_v41 }
 0xbc4   :  { %1628 = vmatpush.msrb.mxu1 %v2207_v42 }
 0xbc6   :  { %1629 = vmatpush.msrb.mxu1 %v2210_v43 }
 0xbc8   :  { %1630 = vmatpush.msrb.mxu1 %v2213_v45 }
 0xbca   :  { %1631 = vmatpush.msrb.mxu1 %v2216_v46 }
 0xbcc   :  { %1632 = vmatpush.msrb.mxu1 %v2221_v48 }
 0xbd3   :  { %v939_v53 = vpop.permute.xlu1 %938 }
 0xbd4   :  { %v941_v54 = vsel %vm88_vm4, %v875_v5, %v939_v53 }
 0xbd5   :  { %1741 = vmatmul.msk.f32.vlgmr.msrb.gmra.mxu3 %vm217_vm5, %v941_v54 }
 0xbd6   :  { %1419 = vmatpush.msrb.mxu3 %v2199_v39 }
 0xbd8   :  { %1420 = vmatpush.msrb.mxu3 %v2201_v40 }
 0xbda   :  { %1421 = vmatpush.msrb.mxu3 %v2204_v41 }
 0xbdc   :  { %1422 = vmatpush.msrb.mxu3 %v2207_v42 }
 0xbde   :  { %1423 = vmatpush.msrb.mxu3 %v2210_v43 }
 0xbe0   :  { %1424 = vmatpush.msrb.mxu3 %v2213_v45 }
 0xbe2   :  { %1425 = vmatpush.msrb.mxu3 %v2216_v46 }
 0xbe4   :  { %1426 = vmatpush.msrb.mxu3 %v2221_v48  ;;  %v2435_v48 = vld [vmem:[%s2574_s3] ss:$0 sm:$0xff] }
 0xbf5   :  { %v895_v56 = vpop.f32.mrf.mxu2 }
 0xbf6   :  { %v898_v1 = vadd.f32 %v895_v56, %v872_v55 }
 0xbf8   :  { %1871 = vtanh.f32 %v898_v1  ;;  %v1740_v42 = vmul.f32 -1.442695, %v898_v1 }
 0xbfe   :  { %v1872_v2 = vpop.eup %1871 }
 0xbff   :  { %921 = vrot.lane.b32.xlu1 %v1872_v2, %s2036_s1 }
 0xc3a   :  { %v1030_v39 = vpop.f32.mrf.mxu1 }
 0xc3b   :  { %v1031_v40 = vadd.f32 %v2266_v60, %v1030_v39 }
 0xc3d   :  { %1873 = vtanh.f32 %v1031_v40  ;;  %v1744_v11 = vmul.f32 -1.442695, %v1031_v40 }
 0xc3e   :  { %1875 = vpow2.f32 %v1740_v42 }
 0xc43   :  { %v1874_v41 = vpop.eup %1873 }
 0xc44   :  { %1055 = vrot.lane.b32.xlu0 %v1874_v41, %s2036_s1  ;;  %v1876_v43 = vpop.eup %1875 }
 0xc45   :  { %v902_v45 = vadd.f32 1.0, %v1876_v43 }
 0xc47   :  { %1877 = vrcp.f32 %v902_v45  ;;  %v914_v63 = vand.u32 2147483648, %v902_v45  ;;  %vm908_vm9 = vweird.f32 %v902_v45  ;;  %v912_v0 = vand.u32 2147483647, %v902_v45 }
 0xc49   :  { %v915_v15 = vor.u32 1.1754944e-38, %v914_v63  ;;  %vm913_vm11 = vcmp.eq.f32.partialorder %v912_v0, 8.507059e+37  ;;  %v1975_v63 = vld [vmem:[#allocation5 + $0x40] sm:$0xff] }
 0xc4d   :  { %v1878_v4 = vpop.eup %1877 }
 0xc4e   :  { %v904_v60 = vmul.f32 %v1878_v4, %v902_v45  ;;  %vm909_vm8 = vweird.f32 %v1878_v4 }
 0xc4f   :  { %vm910_vm10 = vmor %vm908_vm9, %vm909_vm8 }
 0xc50   :  { %v905_v58 = vsub.f32 1.0, %v904_v60  ;;  %v1970_v60 = vld [vmem:[#allocation5 + $0x68] sm:$0xff] }
 0xc52   :  { %v906_v59 = vmul.f32 %v1878_v4, %v905_v58  ;;  %v1972_v58 = vld [vmem:[#allocation5 + $0x58] sm:$0xff] }
 0xc54   :  { %v907_v62 = vadd.f32 %v1878_v4, %v906_v59  ;;  %v1973_v59 = vld [vmem:[#allocation5 + $0x50] sm:$0xff] }
 0xc56   :  { %v911_v6 = vsel %vm910_vm10, %v1878_v4, %v907_v62  ;;  %v1969_v4 = vld [vmem:[#allocation5 + $0x70] sm:$0xff]  ;;  %v1974_v62 = vld [vmem:[#allocation5 + $0x48] sm:$0xff] }
 0xc57   :  { %v2439_v7 = vsel %vm913_vm11, %v915_v15, %v911_v6 }
 0xc58   :  { %v962_v46 = vpop.f32.mrf.mxu3  ;;  %v919_v44 = vmul.f32 %v2439_v7, %v2381_v33 }
 0xc59   :  { %v963_v3 = vadd.f32 %v2435_v48, %v962_v46 }
 0xc5b   :  { %1879 = vtanh.f32 %v963_v3  ;;  %v1742_v12 = vmul.f32 -1.442695, %v963_v3  ;;  %v1968_v3 = vld [vmem:[#allocation5 + $0x78] sm:$0xff] }
 0xc5c   :  { %1881 = vpow2.f32 %v1744_v11 }
 0xc5d   :  { %1883 = vpow2.f32 %v1742_v12 }
 0xc61   :  { %v1880_v57 = vpop.eup %1879 }
 0xc62   :  { %987 = vrot.lane.b32.xlu2 %v1880_v57, %s2036_s1  ;;  %v1882_v14 = vpop.eup %1881  ;;  %v1971_v57 = vld [vmem:[#allocation5 + $0x60] sm:$0xff] }
 0xc63   :  { %v1036_v16 = vadd.f32 1.0, %v1882_v14  ;;  %v1884_v18 = vpop.eup %1883 }
 0xc64   :  { %v968_v17 = vadd.f32 1.0, %v1884_v18 }
 0xc65   :  { %1885 = vrcp.f32 %v1036_v16  ;;  %v1048_v21 = vand.u32 2147483648, %v1036_v16  ;;  %vm1042_vm13 = vweird.f32 %v1036_v16  ;;  %v1046_v32 = vand.u32 2147483647, %v1036_v16 }
 0xc66   :  { %1887 = vrcp.f32 %v968_v17  ;;  %v980_v27 = vand.u32 2147483648, %v968_v17  ;;  %vm974_vm1 = vweird.f32 %v968_v17  ;;  %v978_v8 = vand.u32 2147483647, %v968_v17 }
 0xc67   :  { %v1049_v34 = vor.u32 1.1754944e-38, %v1048_v21  ;;  %vm1047_vm15 = vcmp.eq.f32.partialorder %v1046_v32, 8.507059e+37 }
 0xc68   :  { %v981_v47 = vor.u32 1.1754944e-38, %v980_v27  ;;  %vm979_vm3 = vcmp.eq.f32.partialorder %v978_v8, 8.507059e+37 }
 0xc6b   :  { %v1886_v13 = vpop.eup %1885 }
 0xc6c   :  { %v1038_v25 = vmul.f32 %v1886_v13, %v1036_v16  ;;  %v1888_v19 = vpop.eup %1887  ;;  %vm1043_vm12 = vweird.f32 %v1886_v13 }
 0xc6d   :  { %v970_v23 = vmul.f32 %v1888_v19, %v968_v17  ;;  %vm1044_vm14 = vmor %vm1042_vm13, %vm1043_vm12  ;;  %vm975_vm0 = vweird.f32 %v1888_v19 }
 0xc6e   :  { %v1039_v20 = vsub.f32 1.0, %v1038_v25  ;;  %vm976_vm2 = vmor %vm974_vm1, %vm975_vm0 }
 0xc6f   :  { %v971_v30 = vsub.f32 1.0, %v970_v23  ;;  %v2477_v23 = vld [vmem:[%s2574_s3 + $0x1] ss:$0 sm:$0xff] }
 0xc70   :  { %v1040_v29 = vmul.f32 %v1886_v13, %v1039_v20 }
 0xc71   :  { %v922_v9 = vpop.permute.xlu1 %921  ;;  %v972_v24 = vmul.f32 %v1888_v19, %v971_v30 }
 0xc72   :  { %v924_v10 = vmul.f32 %v922_v9, %v2439_v7  ;;  %v1041_v31 = vadd.f32 %v1886_v13, %v1040_v29 }
 0xc73   :  { %v973_v35 = vadd.f32 %v1888_v19, %v972_v24 }
 0xc74   :  { %926 = vrot.lane.b32.xlu1 %v924_v10, %s2030_s7  ;;  %v1045_v26 = vsel %vm1044_vm14, %v1886_v13, %v1041_v31  ;;  %v1071_v10 = vld [vmem:[#allocation3 + $0xc] sm:$0x3] }
 0xc75   :  { %v1050_v38 = vsel %vm1047_vm15, %v1049_v34, %v1045_v26  ;;  %v977_v22 = vsel %vm976_vm2, %v1888_v19, %v973_v35 }
 0xc76   :  { %v982_v49 = vsel %vm979_vm3, %v981_v47, %v977_v22  ;;  %v1053_v33 = vmul.f32 %v1050_v38, %v2386_v28 }
 0xc77   :  { %v985_v54 = vmul.f32 %v982_v49, %v2391_v36 }
 0xcb6   :  { %v1056_v61 = vpop.permute.xlu0 %1055 }
 0xcb7   :  { %v1058_v37 = vmul.f32 %v1056_v61, %v1050_v38 }
 0xcb9   :  { %1060 = vrot.lane.b32.xlu0 %v1058_v37, %s2030_s7 }
 0xcbc   :  { %v988_v50 = vpop.permute.xlu2 %987 }
 0xcbd   :  { %v990_v5 = vmul.f32 %v988_v50, %v982_v49 }
 0xcbf   :  { %992 = vrot.lane.b32.xlu2 %v990_v5, %s2030_s7 }
 0xce6   :  { %v927_v51 = vpop.permute.xlu1 %926 }
 0xce7   :  { %v2447_v52 = vadd.f32 %v927_v51, %v919_v44 }
 0xce9   :  { %1889 = vtanh.f32 %v2447_v52 }
 0xcef   :  { %v1890_v53 = vpop.eup %1889 }
 0xcf0   :  { %932 = vrot.lane.b32.xlu1 %v1890_v53, %s2036_s1 }
 0xd19   :  { %v993_v55 = vpop.permute.xlu2 %992 }
 0xd1a   :  { %v2452_v56 = vadd.f32 %v993_v55, %v985_v54 }
 0xd1c   :  { %1891 = vtanh.f32 %v2452_v56 }
 0xd22   :  { %v1892_v1 = vpop.eup %1891 }
 0xd23   :  { %998 = vrot.lane.b32.xlu2 %v1892_v1, %s2036_s1 }
 0xd2b   :  { %v1061_v2 = vpop.permute.xlu0 %1060 }
 0xd2c   :  { %v2457_v39 = vadd.f32 %v1061_v2, %v1053_v33 }
 0xd2e   :  { %1893 = vtanh.f32 %v2457_v39 }
 0xd34   :  { %v1894_v40 = vpop.eup %1893 }
 0xd35   :  { %1066 = vrot.lane.b32.xlu0 %v1894_v40, %s2036_s1 }
 0xd62   :  { %v933_v41 = vpop.permute.xlu1 %932 }
 0xd63   :  { %v935_v36 = vmul.f32 %v933_v41, %v2439_v7 }
 0xd65   :  { %1073 = vrot.lane.b32.xlu1 %v935_v36, %s2030_s7 }
 0xd7d   :  { %v999_v42 = vpop.permute.xlu2 %998 }
 0xd7e   :  { %v1001_v43 = vmul.f32 %v999_v42, %v982_v49 }
 0xd80   :  { %1137 = vrot.lane.b32.xlu1 %v1001_v43, %s2036_s1  ;;  %1201 = vrot.lane.b32.xlu2 %v1001_v43, %s2030_s7 }
 0xda7   :  { %v1067_v28 = vpop.permute.xlu0 %1066 }
 0xda8   :  { %v1069_v45 = vmul.f32 %v1067_v28, %v1050_v38 }
 0xdaa   :  { %1205 = vrot.lane.b32.xlu0 %v1069_v45, %s2036_s1 }
 0xdd7   :  { %v1074_v46 = vpop.permute.xlu1 %1073 }
 0xdd8   :  { %1745 = vmatmul.msk.f32.vlgmr.msrb.gmra.mxu2 %vm88_vm4, %v1074_v46 }
 0xdd9   :  { %1556 = vmatpush.msrb.mxu2 %v1968_v3 }
 0xdda   :  { %v1202_v15 = vpop.permute.xlu2 %1201 }
 0xddb   :  { %1557 = vmatpush.msrb.mxu2 %v1969_v4 }
 0xddd   :  { %1558 = vmatpush.msrb.mxu2 %v1970_v60 }
 0xddf   :  { %1559 = vmatpush.msrb.mxu2 %v1971_v57 }
 0xde1   :  { %1560 = vmatpush.msrb.mxu2 %v1972_v58 }
 0xde3   :  { %1561 = vmatpush.msrb.mxu2 %v1973_v59 }
 0xde5   :  { %1562 = vmatpush.msrb.mxu2 %v1974_v62 }
 0xde7   :  { %1563 = vmatpush.msrb.mxu2 %v1975_v63 }
 0xdf2   :  { %v1138_v0 = vpop.permute.xlu1 %1137 }
 0xdf3   :  { %v1140_v6 = vsel %vm88_vm4, %v1074_v46, %v1138_v0 }
 0xdf4   :  { %1747 = vmatmul.msk.f32.vlgmr.msra.gmra.mxu0 %vm217_vm5, %v1140_v6 }
 0xe1c   :  { %v1206_v7 = vpop.permute.xlu0 %1205 }
 0xe1d   :  { %v1208_v9 = vsel %vm88_vm4, %v1202_v15, %v1206_v7 }
 0xe1e   :  { %1749 = vmatmul.msk.f32.vlgmr.msra.gmra.mxu2 %vm217_vm5, %v1208_v9 }
 0xe5b   :  { %v1094_v11 = vpop.f32.mrf.mxu2 }
 0xe5c   :  { %v1097_v12 = vadd.f32 %v1094_v11, %v1071_v10 }
 0xe5e   :  { %1895 = vtanh.f32 %v1097_v12  ;;  %v1746_v13 = vmul.f32 -1.442695, %v1097_v12 }
 0xe64   :  { %v1896_v14 = vpop.eup %1895 }
 0xe65   :  { %1120 = vrot.lane.b32.xlu2 %v1896_v14, %s2036_s1 }
 0xe71   :  { %v1161_v16 = vpop.f32.mrf.mxu0 }
 0xe72   :  { %v1162_v18 = vadd.f32 %v2435_v48, %v1161_v16 }
 0xe74   :  { %1897 = vtanh.f32 %v1162_v18  ;;  %v1748_v8 = vmul.f32 -1.442695, %v1162_v18 }
 0xe75   :  { %1899 = vpow2.f32 %v1746_v13 }
 0xe7a   :  { %v1898_v17 = vpop.eup %1897 }
 0xe7b   :  { %1186 = vrot.lane.b32.xlu0 %v1898_v17, %s2036_s1  ;;  %v1900_v25 = vpop.eup %1899 }
 0xe7c   :  { %v1101_v19 = vadd.f32 1.0, %v1900_v25 }
 0xe7e   :  { %1901 = vrcp.f32 %v1101_v19  ;;  %v1113_v34 = vand.u32 2147483648, %v1101_v19  ;;  %vm1107_vm7 = vweird.f32 %v1101_v19  ;;  %v1111_v35 = vand.u32 2147483647, %v1101_v19 }
 0xe80   :  { %v1114_v38 = vor.u32 1.1754944e-38, %v1113_v34  ;;  %vm1112_vm9 = vcmp.eq.f32.partialorder %v1111_v35, 8.507059e+37 }
 0xe84   :  { %v1902_v30 = vpop.eup %1901 }
 0xe85   :  { %v1103_v21 = vmul.f32 %v1902_v30, %v1101_v19  ;;  %vm1108_vm6 = vweird.f32 %v1902_v30 }
 0xe86   :  { %vm1109_vm8 = vmor %vm1107_vm7, %vm1108_vm6 }
 0xe87   :  { %v1104_v32 = vsub.f32 1.0, %v1103_v21  ;;  %v1270_v21 = vld [vmem:[#allocation3 + $0xe] sm:$0x3] }
 0xe89   :  { %v1105_v24 = vmul.f32 %v1902_v30, %v1104_v32 }
 0xe8b   :  { %v1106_v26 = vadd.f32 %v1902_v30, %v1105_v24 }
 0xe8d   :  { %v1110_v61 = vsel %vm1109_vm8, %v1902_v30, %v1106_v26 }
 0xe8e   :  { %v1115_v27 = vsel %vm1112_vm9, %v1114_v38, %v1110_v61 }
 0xe8f   :  { %v1118_v59 = vmul.f32 %v1115_v27, %v2447_v52 }
 0xea1   :  { %v1229_v20 = vpop.f32.mrf.mxu2 }
 0xea2   :  { %v1230_v29 = vadd.f32 %v2477_v23, %v1229_v20 }
 0xea4   :  { %1903 = vtanh.f32 %v1230_v29  ;;  %v1750_v36 = vmul.f32 -1.442695, %v1230_v29 }
 0xea5   :  { %1905 = vpow2.f32 %v1748_v8 }
 0xeaa   :  { %v1904_v31 = vpop.eup %1903 }
 0xeab   :  { %1254 = vrot.lane.b32.xlu1 %v1904_v31, %s2036_s1  ;;  %v1906_v47 = vpop.eup %1905 }
 0xeac   :  { %v1167_v49 = vadd.f32 1.0, %v1906_v47 }
 0xeae   :  { %1907 = vrcp.f32 %v1167_v49  ;;  %v1179_v54 = vand.u32 2147483648, %v1167_v49  ;;  %vm1173_vm11 = vweird.f32 %v1167_v49  ;;  %v1177_v55 = vand.u32 2147483647, %v1167_v49 }
 0xeaf   :  { %1909 = vpow2.f32 %v1750_v36 }
 0xeb0   :  { %v1180_v33 = vor.u32 1.1754944e-38, %v1179_v54  ;;  %vm1178_vm13 = vcmp.eq.f32.partialorder %v1177_v55, 8.507059e+37 }
 0xeb4   :  { %v1908_v50 = vpop.eup %1907 }
 0xeb5   :  { %v1169_v5 = vmul.f32 %v1908_v50, %v1167_v49  ;;  %vm1174_vm10 = vweird.f32 %v1908_v50  ;;  %v1910_v42 = vpop.eup %1909 }
 0xeb6   :  { %vm1175_vm12 = vmor %vm1173_vm11, %vm1174_vm10  ;;  %v1235_v43 = vadd.f32 1.0, %v1910_v42 }
 0xeb7   :  { %v1170_v44 = vsub.f32 1.0, %v1169_v5 }
 0xeb8   :  { %1911 = vrcp.f32 %v1235_v43  ;;  %v1247_v60 = vand.u32 2147483648, %v1235_v43  ;;  %vm1241_vm15 = vweird.f32 %v1235_v43  ;;  %v1245_v57 = vand.u32 2147483647, %v1235_v43 }
 0xeb9   :  { %v1171_v51 = vmul.f32 %v1908_v50, %v1170_v44 }
 0xeba   :  { %v1248_v62 = vor.u32 1.1754944e-38, %v1247_v60  ;;  %vm1246_vm1 = vcmp.eq.f32.partialorder %v1245_v57, 8.507059e+37 }
 0xebb   :  { %v1172_v53 = vadd.f32 %v1908_v50, %v1171_v51 }
 0xebd   :  { %v1176_v1 = vsel %vm1175_vm12, %v1908_v50, %v1172_v53 }
 0xebe   :  { %v1181_v40 = vsel %vm1178_vm13, %v1180_v33, %v1176_v1  ;;  %v1912_v28 = vpop.eup %1911 }
 0xebf   :  { %v1121_v37 = vpop.permute.xlu2 %1120  ;;  %v1237_v45 = vmul.f32 %v1912_v28, %v1235_v43  ;;  %vm1242_vm14 = vweird.f32 %v1912_v28  ;;  %v1184_v10 = vmul.f32 %v1181_v40, %v2452_v56 }
 0xec0   :  { %v1123_v22 = vmul.f32 %v1121_v37, %v1115_v27  ;;  %vm1243_vm0 = vmor %vm1241_vm15, %vm1242_vm14 }
 0xec1   :  { %v1238_v46 = vsub.f32 1.0, %v1237_v45 }
 0xec2   :  { %1125 = vrot.lane.b32.xlu2 %v1123_v22, %s2030_s7 }
 0xec3   :  { %v1239_v3 = vmul.f32 %v1912_v28, %v1238_v46 }
 0xec5   :  { %v1240_v4 = vadd.f32 %v1912_v28, %v1239_v3 }
 0xec7   :  { %v1244_v58 = vsel %vm1243_vm0, %v1912_v28, %v1240_v4 }
 0xec8   :  { %v1249_v15 = vsel %vm1246_vm1, %v1248_v62, %v1244_v58 }
 0xec9   :  { %v1252_v18 = vmul.f32 %v1249_v15, %v2457_v39 }
 0xeed   :  { %v1187_v2 = vpop.permute.xlu0 %1186 }
 0xeee   :  { %v1189_v41 = vmul.f32 %v1187_v2, %v1181_v40 }
 0xef0   :  { %1191 = vrot.lane.b32.xlu0 %v1189_v41, %s2030_s7 }
 0xf1c   :  { %v1126_v63 = vpop.permute.xlu2 %1125 }
 0xf1d   :  { %v2484_v0 = vadd.f32 %v1126_v63, %v1118_v59  ;;  %v1255_v6 = vpop.permute.xlu1 %1254 }
 0xf1e   :  { %v1257_v7 = vmul.f32 %v1255_v6, %v1249_v15 }
 0xf1f   :  { %1913 = vtanh.f32 %v2484_v0 }
 0xf20   :  { %1259 = vrot.lane.b32.xlu1 %v1257_v7, %s2030_s7 }
 0xf25   :  { %v1914_v9 = vpop.eup %1913 }
 0xf26   :  { %1131 = vrot.lane.b32.xlu2 %v1914_v9, %s2036_s1 }
 0xf62   :  { %v1192_v11 = vpop.permute.xlu0 %1191 }
 0xf63   :  { %v2490_v12 = vadd.f32 %v1192_v11, %v1184_v10 }
 0xf65   :  { %1915 = vtanh.f32 %v2490_v12 }
 0xf6b   :  { %v1916_v52 = vpop.eup %1915 }
 0xf6c   :  { %1197 = vrot.lane.b32.xlu0 %v1916_v52, %s2036_s1 }
 0xf80   :  { %v1132_v14 = vpop.permute.xlu2 %1131 }
 0xf81   :  { %v1134_v16 = vmul.f32 %v1132_v14, %v1115_v27 }
 0xf83   :  { %1272 = vrot.lane.b32.xlu2 %v1134_v16, %s2030_s7 }
 0xf92   :  { %v1260_v17 = vpop.permute.xlu1 %1259 }
 0xf93   :  { %v2496_v13 = vadd.f32 %v1260_v17, %v1252_v18 }
 0xf95   :  { %1917 = vtanh.f32 %v2496_v13 }
 0xf9b   :  { %v1918_v56 = vpop.eup %1917 }
 0xf9c   :  { %1265 = vrot.lane.b32.xlu1 %v1918_v56, %s2036_s1 }
 0xfdd   :  { %v1273_v25 = vpop.permute.xlu2 %1272 }
 0xfde   :  { %v1198_v19 = vpop.permute.xlu0 %1197  ;;  %1751 = vmatmul.msk.f32.vlgmr.msra.gmra.mxu3 %vm88_vm4, %v1273_v25 }
 0xfdf   :  { %v1200_v20 = vmul.f32 %v1198_v19, %v1181_v40 }
 0xfe1   :  { %1400 = vrot.lane.b32.xlu0 %v1200_v20, %s2030_s7  ;;  %1336 = vrot.lane.b32.xlu2 %v1200_v20, %s2036_s1 }
0x100e   :  { %v1266_v29 = vpop.permute.xlu1 %1265 }
0x100f   :  { %v1268_v30 = vmul.f32 %v1266_v29, %v1249_v15 }
0x1011   :  { %1404 = vrot.lane.b32.xlu1 %v1268_v30, %s2036_s1 }
0x103b   :  { %v1337_v39 = vpop.permute.xlu2 %1336 }
0x103c   :  { %v1339_v31 = vsel %vm88_vm4, %v1273_v25, %v1337_v39 }
0x103d   :  { %1753 = vmatmul.msk.f32.vlgmr.msra.gmra.mxu1 %vm217_vm5, %v1339_v31 }
0x1053   :  { %v1401_v34 = vpop.permute.xlu0 %1400 }
0x1061   :  { %v1293_v32 = vpop.f32.mrf.mxu3 }
0x1062   :  { %v1296_v24 = vadd.f32 %v1293_v32, %v1270_v21 }
0x1064   :  { %1919 = vtanh.f32 %v1296_v24  ;;  %v1752_v38 = vmul.f32 -1.442695, %v1296_v24 }
0x1066   :  { %1921 = vpow2.f32 %v1752_v38 }
0x106a   :  { %v1920_v26 = vpop.eup %1919 }
0x106b   :  { %1319 = vrot.lane.b32.xlu2 %v1920_v26, %s2036_s1 }
0x106c   :  { %v1922_v27 = vpop.eup %1921 }
0x106d   :  { %v1300_v37 = vadd.f32 1.0, %v1922_v27 }
0x106f   :  { %1923 = vrcp.f32 %v1300_v37  ;;  %v1312_v51 = vand.u32 2147483648, %v1300_v37  ;;  %vm1306_vm3 = vweird.f32 %v1300_v37  ;;  %v1310_v53 = vand.u32 2147483647, %v1300_v37 }
0x1071   :  { %v1313_v1 = vor.u32 1.1754944e-38, %v1312_v51  ;;  %vm1311_vm7 = vcmp.eq.f32.partialorder %v1310_v53, 8.507059e+37 }
0x1075   :  { %v1924_v8 = vpop.eup %1923 }
0x1076   :  { %v1302_v22 = vmul.f32 %v1924_v8, %v1300_v37  ;;  %vm1307_vm2 = vweird.f32 %v1924_v8 }
0x1077   :  { %vm1308_vm6 = vmor %vm1306_vm3, %vm1307_vm2 }
0x1078   :  { %v1303_v47 = vsub.f32 1.0, %v1302_v22 }
0x107a   :  { %v1304_v50 = vmul.f32 %v1924_v8, %v1303_v47 }
0x107c   :  { %v1305_v44 = vadd.f32 %v1924_v8, %v1304_v50 }
0x107e   :  { %v1309_v54 = vsel %vm1308_vm6, %v1924_v8, %v1305_v44 }
0x107f   :  { %v1314_v33 = vsel %vm1311_vm7, %v1313_v1, %v1309_v54 }
0x1080   :  { %v1317_v3 = vmul.f32 %v1314_v33, %v2484_v0 }
0x1083   :  { %v1405_v35 = vpop.permute.xlu1 %1404 }
0x1084   :  { %v1407_v61 = vsel %vm88_vm4, %v1401_v34, %v1405_v35 }
0x1085   :  { %1755 = vmatmul.msk.f32.vlgmr.msrb.gmra.mxu3 %vm217_vm5, %v1407_v61 }
0x10ba   :  { %v1360_v49 = vpop.f32.mrf.mxu1 }
0x10bb   :  { %v1361_v5 = vadd.f32 %v2435_v48, %v1360_v49 }
0x10bd   :  { %1925 = vtanh.f32 %v1361_v5  ;;  %v1754_v36 = vmul.f32 -1.442695, %v1361_v5 }
0x10c3   :  { %v1926_v55 = vpop.eup %1925 }
0x10c4   :  { %1385 = vrot.lane.b32.xlu0 %v1926_v55, %s2036_s1 }
0x10c5   :  { %v1320_v2 = vpop.permute.xlu2 %1319 }
0x10c6   :  { %v1322_v40 = vmul.f32 %v1320_v2, %v1314_v33 }
0x10c8   :  { %1324 = vrot.lane.b32.xlu2 %v1322_v40, %s2030_s7 }
0x1108   :  { %v1428_v41 = vpop.f32.mrf.mxu3 }
0x1109   :  { %v1429_v42 = vadd.f32 %v2477_v23, %v1428_v41 }
0x110b   :  { %1927 = vtanh.f32 %v1429_v42  ;;  %v1756_v52 = vmul.f32 -1.442695, %v1429_v42 }
0x110c   :  { %1929 = vpow2.f32 %v1754_v36 }
0x1111   :  { %v1928_v43 = vpop.eup %1927 }
0x1112   :  { %1453 = vrot.lane.b32.xlu1 %v1928_v43, %s2036_s1  ;;  %v1930_v28 = vpop.eup %1929 }
0x1113   :  { %v1366_v45 = vadd.f32 1.0, %v1930_v28 }
0x1115   :  { %1931 = vrcp.f32 %v1366_v45  ;;  %v1378_v6 = vand.u32 2147483648, %v1366_v45  ;;  %vm1372_vm9 = vweird.f32 %v1366_v45  ;;  %v1376_v15 = vand.u32 2147483647, %v1366_v45 }
0x1117   :  { %v1379_v9 = vor.u32 1.1754944e-38, %v1378_v6  ;;  %vm1377_vm11 = vcmp.eq.f32.partialorder %v1376_v15, 8.507059e+37 }
0x111b   :  { %v1932_v46 = vpop.eup %1931 }
0x111c   :  { %v1368_v57 = vmul.f32 %v1932_v46, %v1366_v45  ;;  %vm1373_vm8 = vweird.f32 %v1932_v46 }
0x111d   :  { %vm1374_vm10 = vmor %vm1372_vm9, %vm1373_vm8 }
0x111e   :  { %v1369_v58 = vsub.f32 1.0, %v1368_v57 }
0x1120   :  { %v1370_v62 = vmul.f32 %v1932_v46, %v1369_v58 }
0x1122   :  { %v1325_v4 = vpop.permute.xlu2 %1324  ;;  %v1371_v63 = vadd.f32 %v1932_v46, %v1370_v62 }
0x1123   :  { %v1327_v60 = vadd.f32 %v1325_v4, %v1317_v3 }
0x1124   :  { %v1375_v7 = vsel %vm1374_vm10, %v1932_v46, %v1371_v63 }
0x1125   :  { %1933 = vtanh.f32 %v1327_v60  ;;  %v1380_v0 = vsel %vm1377_vm11, %v1379_v9, %v1375_v7 }
0x1126   :  { %1935 = vpow2.f32 %v1756_v52  ;;  %v1383_v34 = vmul.f32 %v1380_v0, %v2490_v12 }
0x112b   :  { %v1934_v59 = vpop.eup %1933 }
0x112c   :  { %1330 = vrot.lane.b32.xlu2 %v1934_v59, %s2036_s1  ;;  %v1936_v14 = vpop.eup %1935 }
0x112d   :  { %v1434_v16 = vadd.f32 1.0, %v1936_v14 }
0x112f   :  { %1937 = vrcp.f32 %v1434_v16  ;;  %v1446_v20 = vand.u32 2147483648, %v1434_v16  ;;  %vm1440_vm13 = vweird.f32 %v1434_v16  ;;  %v1444_v29 = vand.u32 2147483647, %v1434_v16 }
0x1131   :  { %v1447_v39 = vor.u32 1.1754944e-38, %v1446_v20  ;;  %vm1445_vm15 = vcmp.eq.f32.partialorder %v1444_v29, 8.507059e+37 }
0x1135   :  { %v1938_v18 = vpop.eup %1937 }
0x1136   :  { %v1386_v10 = vpop.permute.xlu0 %1385  ;;  %v1436_v17 = vmul.f32 %v1938_v18, %v1434_v16  ;;  %vm1441_vm12 = vweird.f32 %v1938_v18 }
0x1137   :  { %v1388_v11 = vmul.f32 %v1386_v10, %v1380_v0  ;;  %vm1442_vm14 = vmor %vm1440_vm13, %vm1441_vm12  ;;  %vm1707_vm13 = vcmask 1024  }
0x1138   :  { %v1437_v56 = vsub.f32 1.0, %v1436_v17 }
0x1139   :  { %1390 = vrot.lane.b32.xlu0 %v1388_v11, %s2030_s7 }
0x113a   :  { %v1438_v25 = vmul.f32 %v1938_v18, %v1437_v56 }
0x113c   :  { %v1439_v19 = vadd.f32 %v1938_v18, %v1438_v25 }
0x113e   :  { %v1443_v30 = vsel %vm1442_vm14, %v1938_v18, %v1439_v19 }
0x113f   :  { %v1448_v21 = vsel %vm1445_vm15, %v1447_v39, %v1443_v30 }
0x1140   :  { %v1451_v27 = vmul.f32 %v1448_v21, %v2496_v13 }
0x1184   :  { %v1454_v31 = vpop.permute.xlu1 %1453 }
0x1185   :  { %v1456_v32 = vmul.f32 %v1454_v31, %v1448_v21 }
0x1186   :  { %v1331_v24 = vpop.permute.xlu2 %1330 }
0x1187   :  { %v1333_v26 = vmul.f32 %v1331_v24, %v1314_v33  ;;  %1458 = vrot.lane.b32.xlu1 %v1456_v32, %s2030_s7 }
0x1189   :  { %1469 = vrot.lane.b32.xlu2 %v1333_v26, %s2030_s7 }
0x11ab   :  { %v1391_v35 = vpop.permute.xlu0 %1390 }
0x11ac   :  { %v2520_v61 = vadd.f32 %v1391_v35, %v1383_v34 }
0x11ae   :  { %1939 = vtanh.f32 %v2520_v61 }
0x11b4   :  { %v1940_v38 = vpop.eup %1939 }
0x11b5   :  { %1396 = vrot.lane.b32.xlu0 %v1940_v38, %s2036_s1 }
0x11e3   :  { %v1470_v13 = vpop.permute.xlu2 %1469 }
0x11f9   :  { %v1459_v37 = vpop.permute.xlu1 %1458 }
0x11fa   :  { %v2525_v8 = vadd.f32 %v1459_v37, %v1451_v27 }
0x11fc   :  { %1941 = vtanh.f32 %v2525_v8 }
0x1202   :  { %v1942_v22 = vpop.eup %1941 }
0x1203   :  { %1464 = vrot.lane.b32.xlu1 %v1942_v22, %s2036_s1 }
0x1227   :  { %v1397_v47 = vpop.permute.xlu0 %1396 }
0x1228   :  { %v1399_v12 = vmul.f32 %v1397_v47, %v1380_v0 }
0x122a   :  { %1537 = vrot.lane.b32.xlu0 %v1399_v12, %s2030_s7 }
0x1232   :  { %1473 = vrot.lane.b32.xlu0 %v1399_v12, %s2036_s1 }
0x1275   :  { %v1465_v49 = vpop.permute.xlu1 %1464 }
0x1276   :  { %v1467_v50 = vmul.f32 %v1465_v49, %v1448_v21 }
0x1278   :  { %1541 = vrot.lane.b32.xlu1 %v1467_v50, %s2036_s1 }
0x129c   :  { %v1538_v5 = vpop.permute.xlu0 %1537 }
0x12a4   :  { %v1474_v44 = vpop.permute.xlu0 %1473 }
0x12a5   :  { %v1476_v51 = vsel %vm88_vm4, %v1470_v13, %v1474_v44 }
0x12a6   :  { %1757 = vmatmul.msk.f32.vlgmr.msrb.gmra.mxu0 %vm217_vm5, %v1476_v51 }
0x12ea   :  { %v1542_v53 = vpop.permute.xlu1 %1541 }
0x12eb   :  { %v1544_v54 = vsel %vm88_vm4, %v1538_v5, %v1542_v53 }
0x12ec   :  { %1759 = vmatmul.msk.f32.vlgmr.msrb.gmra.mxu2 %vm217_vm5, %v1544_v54 }
0x1323   :  { %v1497_v55 = vpop.f32.mrf.mxu0 }
0x1324   :  { %v1498_v1 = vadd.f32 %v2435_v48, %v1497_v55 }
0x1326   :  { %1943 = vtanh.f32 %v1498_v1  ;;  %v1758_v41 = vmul.f32 -1.442695, %v1498_v1 }
0x132c   :  { %v1944_v33 = vpop.eup %1943 }
0x132d   :  { %1522 = vrot.lane.b32.xlu1 %v1944_v33, %s2036_s1 }
0x136f   :  { %v1565_v2 = vpop.f32.mrf.mxu2 }
0x1370   :  { %v1566_v40 = vadd.f32 %v2477_v23, %v1565_v2 }
0x1372   :  { %1945 = vtanh.f32 %v1566_v40  ;;  %v1760_v6 = vmul.f32 -1.442695, %v1566_v40 }
0x1373   :  { %1947 = vpow2.f32 %v1758_v41 }
0x1378   :  { %v1946_v36 = vpop.eup %1945 }
0x1379   :  { %1590 = vrot.lane.b32.xlu2 %v1946_v36, %s2036_s1  ;;  %v1948_v42 = vpop.eup %1947 }
0x137a   :  { %v1503_v43 = vadd.f32 1.0, %v1948_v42 }
0x137c   :  { %1949 = vrcp.f32 %v1503_v43  ;;  %v1515_v4 = vand.u32 2147483648, %v1503_v43  ;;  %vm1509_vm1 = vweird.f32 %v1503_v43  ;;  %v1513_v60 = vand.u32 2147483647, %v1503_v43 }
0x137d   :  { %1951 = vpow2.f32 %v1760_v6 }
0x137e   :  { %v1516_v58 = vor.u32 1.1754944e-38, %v1515_v4  ;;  %vm1514_vm3 = vcmp.eq.f32.partialorder %v1513_v60, 8.507059e+37 }
0x1382   :  { %v1950_v28 = vpop.eup %1949 }
0x1383   :  { %v1505_v45 = vmul.f32 %v1950_v28, %v1503_v43  ;;  %vm1510_vm0 = vweird.f32 %v1950_v28  ;;  %v1952_v15 = vpop.eup %1951 }
0x1384   :  { %vm1511_vm2 = vmor %vm1509_vm1, %vm1510_vm0  ;;  %v1571_v7 = vadd.f32 1.0, %v1952_v15 }
0x1385   :  { %v1506_v46 = vsub.f32 1.0, %v1505_v45  ;;  %v1676_v45 = vld [vmem:[%s2575_s4 + $0x10] sm:$0xff] }
0x1386   :  { %1953 = vrcp.f32 %v1571_v7  ;;  %v1583_v14 = vand.u32 2147483648, %v1571_v7  ;;  %vm1577_vm7 = vweird.f32 %v1571_v7  ;;  %v1581_v16 = vand.u32 2147483647, %v1571_v7 }
0x1387   :  { %v1507_v48 = vmul.f32 %v1950_v28, %v1506_v46  ;;  %v1675_v46 = vld [vmem:[%s2575_s4 + $0x8] sm:$0xff] }
0x1388   :  { %v1584_v17 = vor.u32 1.1754944e-38, %v1583_v14  ;;  %vm1582_vm9 = vcmp.eq.f32.partialorder %v1581_v16, 8.507059e+37 }
0x1389   :  { %v1508_v3 = vadd.f32 %v1950_v28, %v1507_v48  ;;  %v1674_v48 = vld [vmem:[%s2575_s4] sm:$0xff] }
0x138b   :  { %v1512_v57 = vsel %vm1511_vm2, %v1950_v28, %v1508_v3  ;;  %v1677_v28 = vld [vmem:[%s2575_s4 + $0x18] sm:$0xff] }
0x138c   :  { %v1517_v62 = vsel %vm1514_vm3, %v1516_v58, %v1512_v57  ;;  %v1954_v9 = vpop.eup %1953  ;;  %1699 = vmatpush.msra.mxu3 %v1677_v28  ;;  %v1774_v57 = vld [vmem:[#allocation2] ss:$0 sm:$0xff] }
0x138d   :  { %v1573_v10 = vmul.f32 %v1954_v9, %v1571_v7  ;;  %vm1578_vm6 = vweird.f32 %v1954_v9  ;;  %v1520_v20 = vmul.f32 %v1517_v62, %v2520_v61 }
0x138e   :  { %vm1579_vm8 = vmor %vm1577_vm7, %vm1578_vm6  ;;  %1700 = vmatpush.msra.mxu3 %v1676_v45 }
0x138f   :  { %v1574_v0 = vsub.f32 1.0, %v1573_v10 }
0x1390   :  { %1701 = vmatpush.msra.mxu3 %v1675_v46 }
0x1391   :  { %v1575_v11 = vmul.f32 %v1954_v9, %v1574_v0 }
0x1392   :  { %1702 = vmatpush.msra.mxu3 %v1674_v48 }
0x1393   :  { %v1576_v52 = vadd.f32 %v1954_v9, %v1575_v11 }
0x1395   :  { %v1580_v18 = vsel %vm1579_vm8, %v1954_v9, %v1576_v52 }
0x1396   :  { %v1585_v56 = vsel %vm1582_vm9, %v1584_v17, %v1580_v18 }
0x1397   :  { %v1588_v31 = vmul.f32 %v1585_v56, %v2525_v8 }
0x139f   :  { %v1523_v59 = vpop.permute.xlu1 %1522 }
0x13a0   :  { %v1525_v63 = vmul.f32 %v1523_v59, %v1517_v62 }
0x13a2   :  { %1527 = vrot.lane.b32.xlu0 %v1525_v63, %s2030_s7 }
0x13d3   :  { %v1591_v25 = vpop.permute.xlu2 %1590 }
0x13d4   :  { %v1593_v19 = vmul.f32 %v1591_v25, %v1585_v56 }
0x13d6   :  { %1595 = vrot.lane.b32.xlu1 %v1593_v19, %s2030_s7 }
0x1414   :  { %v1528_v29 = vpop.permute.xlu0 %1527 }
0x1415   :  { %v1530_v30 = vadd.f32 %v1528_v29, %v1520_v20 }
0x1417   :  { %1955 = vtanh.f32 %v1530_v30 }
0x141d   :  { %v1956_v39 = vpop.eup %1955 }
0x141e   :  { %1533 = vrot.lane.b32.xlu2 %v1956_v39, %s2036_s1 }
0x1448   :  { %v1596_v21 = vpop.permute.xlu1 %1595 }
0x1449   :  { %v1598_v32 = vadd.f32 %v1596_v21, %v1588_v31 }
0x144b   :  { %1957 = vtanh.f32 %v1598_v32 }
0x1451   :  { %v1958_v24 = vpop.eup %1957 }
0x1452   :  { %1601 = vrot.lane.b32.xlu0 %v1958_v24, %s2036_s1 }
0x1478   :  { %v1534_v26 = vpop.permute.xlu2 %1533 }
0x1479   :  { %v1536_v34 = vmul.f32 %v1534_v26, %v1517_v62 }
0x147b   :  { %1606 = vrot.lane.b32.xlu1 %v1536_v34, %s2030_s7 }
0x14c4   :  { %v1602_v35 = vpop.permute.xlu0 %1601 }
0x14c5   :  { %v1604_v61 = vmul.f32 %v1602_v35, %v1585_v56 }
0x14c7   :  { %1610 = vrot.lane.b32.xlu2 %v1604_v61, %s2036_s1 }
0x14ed   :  { %v1607_v38 = vpop.permute.xlu1 %1606 }
0x1521   :  { %v1611_v27 = vpop.permute.xlu2 %1610 }
0x1522   :  { %v1613_v37 = vsel %vm88_vm4, %v1607_v38, %v1611_v27 }
0x1523   :  { %1761 = vmatmul.msk.f32.vlgmr.msrb.gmra.mxu1 %vm217_vm5, %v1613_v37 }
0x15a0   :  { %v1634_v8 = vpop.f32.mrf.mxu1 }
0x15a1   :  { %v1635_v22 = vadd.f32 %v2477_v23, %v1634_v8 }
0x15a3   :  { %1959 = vtanh.f32 %v1635_v22  ;;  %v1762_v12 = vmul.f32 -1.442695, %v1635_v22 }
0x15a5   :  { %1961 = vpow2.f32 %v1762_v12 }
0x15a9   :  { %v1960_v47 = vpop.eup %1959 }
0x15aa   :  { %1659 = vrot.lane.b32.xlu0 %v1960_v47, %s2036_s1 }
0x15ab   :  { %v1962_v49 = vpop.eup %1961 }
0x15ac   :  { %v1640_v50 = vadd.f32 1.0, %v1962_v49 }
0x15ae   :  { %1963 = vrcp.f32 %v1640_v50  ;;  %v1652_v54 = vand.u32 2147483648, %v1640_v50  ;;  %vm1646_vm5 = vweird.f32 %v1640_v50  ;;  %v1650_v55 = vand.u32 2147483647, %v1640_v50 }
0x15b0   :  { %v1653_v1 = vor.u32 1.1754944e-38, %v1652_v54  ;;  %vm1651_vm12 = vcmp.eq.f32.partialorder %v1650_v55, 8.507059e+37 }
0x15b4   :  { %v1964_v5 = vpop.eup %1963 }
0x15b5   :  { %v1642_v13 = vmul.f32 %v1964_v5, %v1640_v50  ;;  %vm1647_vm10 = vweird.f32 %v1964_v5 }
0x15b6   :  { %vm1648_vm11 = vmor %vm1646_vm5, %vm1647_vm10 }
0x15b7   :  { %v1643_v44 = vsub.f32 1.0, %v1642_v13 }
0x15b9   :  { %v1644_v51 = vmul.f32 %v1964_v5, %v1643_v44 }
0x15bb   :  { %v1645_v53 = vadd.f32 %v1964_v5, %v1644_v51 }
0x15bd   :  { %v1649_v23 = vsel %vm1648_vm11, %v1964_v5, %v1645_v53 }
0x15be   :  { %v1654_v2 = vsel %vm1651_vm12, %v1653_v1, %v1649_v23 }
0x15bf   :  { %v1657_v41 = vmul.f32 %v1654_v2, %v1598_v32 }
0x161c   :  { %v1660_v33 = vpop.permute.xlu0 %1659 }
0x161d   :  { %v1662_v40 = vmul.f32 %v1660_v33, %v1654_v2 }
0x161f   :  { %1664 = vrot.lane.b32.xlu1 %v1662_v40, %s2030_s7 }
0x1691   :  { %v1665_v36 = vpop.permute.xlu1 %1664 }
0x1692   :  { %v1667_v42 = vadd.f32 %v1665_v36, %v1657_v41 }
0x1694   :  { %1965 = vtanh.f32 %v1667_v42 }
0x169a   :  { %v1966_v43 = vpop.eup %1965 }
0x169b   :  { %1670 = vrot.lane.b32.xlu2 %v1966_v43, %s2036_s1 }
0x16f5   :  { %v1671_v3 = vpop.permute.xlu2 %1670 }
0x16f6   :  { %v1673_v4 = vmul.f32 %v1671_v3, %v1654_v2 }
0x16f8   :  { %1683 = vrot.lane.b32.xlu0 %v1673_v4, %s2030_s7 }
0x176a   :  { %v1684_v60 = vpop.permute.xlu0 %1683 }
0x176b   :  { %1763 = vmatmul.msk.f32.vlgmr.msra.gmra.mxu3 %vm88_vm4, %v1684_v60 }
0x17ee   :  { %v1704_v58 = vpop.f32.mrf.mxu3 }
0x17ef   :  { %v1705_v59 = vadd.f32 %v1774_v57, %v1704_v58 }
0x17f1   :  { %1708 = vst.msk [vmem:[%s2577_s6] sm:$0x3] %vm1707_vm13, %v1705_v59 }
0x17f2   :  { %1713 = vsyncpa [#allocation4], 1 }
0x17f3   :  { %1714 = vsyncpa [#allocation6], 1 }

</bundles_post_ra>
